<compile_context>
chip_gen: v5e
topology: v5e:2x2
jax: 0.10.0
libtpu: 0.0.40
codegen_flags: <defaults>
</compile_context>

<pallas_src>
import functools
import math

import jax
import jax.numpy as jnp
from jax.experimental import pallas as pl
from jax.experimental.pallas import tpu as pltpu

# Small synthetic BERT config.
CFG = dict(vocab=100, hidden=32, heads=2, layers=2, intermediate=64,
           max_pos=16, types=2)
LN_EPS = 1e-12


# ----------------------------------------------------------------------------
# Kernel: one grid step == one encoder layer (plus embed / head phases).
# ----------------------------------------------------------------------------
def _bert_kernel(ids_ref, bias_ref, kw_ref,
                 word_emb_ref, pos_emb_ref, type_row_ref,
                 emb_ln_g_ref, emb_ln_b_ref,
                 wqkv_ref, bqkv_ref, wo_ref, bo_ref,
                 ln1_g_ref, ln1_b_ref,
                 wi_ref, bi_ref, wf_ref, bf_ref,
                 ln2_g_ref, ln2_b_ref,
                 pool_w_ref, pool_b_ref,
                 w1a_ref, w1b_ref, b1_ref, w2_ref, b2_ref,
                 o_ref,
                 x_ref,                       # VMEM scratch: (M, H) f32, carried across layers
                 *, B, S, NH):
    l = pl.program_id(0)
    n_layers = pl.num_programs(0)
    H = wo_ref.shape[0]
    DH = H // NH
    V = word_emb_ref.shape[0]
    M = B * S
    scale = 1.0 / math.sqrt(DH)
    bf16 = jnp.bfloat16

    def layernorm(v, g, b):                   # f32 math throughout
        mean = jnp.mean(v, axis=-1, keepdims=True)
        var = jnp.mean(jnp.square(v - mean), axis=-1, keepdims=True)
        return (v - mean) * jax.lax.rsqrt(var + LN_EPS) * g + b

    # ---- embeddings (first grid step only): one-hot MXU gather + pos/type ----
    @pl.when(l == 0)
    def _embed():
        ids = ids_ref[...]                                        # (M, 1) int32
        vocab_iota = jax.lax.broadcasted_iota(jnp.int32, (M, V), 1)
        onehot = (vocab_iota == ids).astype(bf16)                 # (M, V) bf16
        emb = jnp.dot(onehot, word_emb_ref[...],
                      preferred_element_type=jnp.float32)         # (M, H) f32
        pos = pos_emb_ref[...][:S]                                # (S, H) f32
        typ = type_row_ref[...]                                   # (1, H) f32 (segment 0)
        emb = (emb.reshape(B, S, H) + pos[None, :, :]
               + typ[None, :, :]).reshape(M, H)
        x_ref[...] = layernorm(emb, emb_ln_g_ref[...], emb_ln_b_ref[...])

    # ---- one encoder layer (this grid step's streamed weights) ---------------
    x = x_ref[...]                                                # (M, H) f32
    x_bf = x.astype(bf16)
    bias_b = bias_ref[...][:, None, :]                            # (NH*B, 1, S) f32, once/layer

    qkv = jnp.dot(x_bf, wqkv_ref[...],
                  preferred_element_type=jnp.float32) + bqkv_ref[...]   # (M, 3H) f32
    qkv_bf = qkv.astype(bf16)

    # Fold heads into the batch dim once; one batched einsum for all heads.
    q_z = jnp.concatenate(
        [qkv_bf[:, h * DH:(h + 1) * DH].reshape(B, S, DH) for h in range(NH)], axis=0)
    k_z = jnp.concatenate(
        [qkv_bf[:, H + h * DH:H + (h + 1) * DH].reshape(B, S, DH) for h in range(NH)], axis=0)
    v_z = jnp.concatenate(
        [qkv_bf[:, 2 * H + h * DH:2 * H + (h + 1) * DH].reshape(B, S, DH) for h in range(NH)],
        axis=0)                                                   # each (NH*B, S, DH) bf16

    s = jnp.einsum('zqd,zkd->zqk', q_z, k_z,
                   preferred_element_type=jnp.float32) * scale    # (NH*B, S, S) f32
    s = s + bias_b
    s = s - jnp.max(s, axis=-1, keepdims=True)                    # f32 softmax stabilization
    p = jnp.exp(s)
    p = p * pl.reciprocal(jnp.sum(p, axis=-1, keepdims=True), approx=True)
    ctx_z = jnp.einsum('zqk,zkd->zqd', p.astype(bf16), v_z,
                       preferred_element_type=jnp.float32)        # (NH*B, S, DH) f32

    # Concatenate heads along lanes, then ONE output-projection matmul.
    ctx = jnp.concatenate(
        [ctx_z[h * B:(h + 1) * B].reshape(M, DH) for h in range(NH)], axis=-1)  # (M, H)
    attn = jnp.dot(ctx.astype(bf16), wo_ref[...],
                   preferred_element_type=jnp.float32) + bo_ref[...]
    x1 = layernorm(attn + x, ln1_g_ref[...], ln1_b_ref[...])

    ffn = jnp.dot(x1.astype(bf16), wi_ref[...],
                  preferred_element_type=jnp.float32) + bi_ref[...]
    # TODO(synk): HF/PyTorch BERT uses exact erf-GELU; tanh approximation used here.
    ffn = jax.nn.gelu(ffn, approximate=True)
    ffn = jnp.dot(ffn.astype(bf16), wf_ref[...],
                  preferred_element_type=jnp.float32) + bf_ref[...]
    x2 = layernorm(ffn + x1, ln2_g_ref[...], ln2_b_ref[...])
    x_ref[...] = x2

    # ---- pooler + regressor head (last grid step only) -----------------------
    @pl.when(l == n_layers - 1)
    def _head():
        # CLS (token 0 of each sequence) row-select via one-hot MXU matmul.
        col = jax.lax.broadcasted_iota(jnp.int32, (B, M), 1)
        row = jax.lax.broadcasted_iota(jnp.int32, (B, M), 0)
        cls_sel = (col == S * row).astype(bf16)                   # (B, M)
        cls = jnp.dot(cls_sel, x2.astype(bf16),
                      preferred_element_type=jnp.float32)         # (B, H)
        pooled = jnp.tanh(jnp.dot(cls.astype(bf16), pool_w_ref[...],
                                  preferred_element_type=jnp.float32) + pool_b_ref[...])
        # regressor: concat(pooled, kw) @ W1 == pooled @ W1[:H] + kw * W1[H]
        h1 = (jnp.dot(pooled.astype(bf16), w1a_ref[...],
                      preferred_element_type=jnp.float32)
              + kw_ref[...] * w1b_ref[...] + b1_ref[...])         # (B, 128) f32
        # nn.Dropout(p) is identity at inference time.
        y = jnp.dot(h1.astype(bf16), w2_ref[...],
                    preferred_element_type=jnp.float32) + b2_ref[...]
        o_ref[...] = y.astype(o_ref.dtype)                        # (B, 1)


# ----------------------------------------------------------------------------
# Wrapper: single pallas_call, grid over layers, per-layer weights streamed.
# ----------------------------------------------------------------------------
def _rep_spec(shape):
    zeros = (0,) * len(shape)
    return pl.BlockSpec(shape, lambda l: zeros)          # same block every layer step


def _layer_spec(shape):
    zeros = (0,) * len(shape)
    return pl.BlockSpec((None,) + shape, lambda l: (l,) + zeros)   # squeeze layer dim


def bert_regressor_forward(params, input_ids, attention_mask, keyword_count):
    B, S = input_ids.shape
    H, I = CFG['hidden'], CFG['intermediate']
    V, P = CFG['vocab'], CFG['max_pos']
    NH, L = CFG['heads'], CFG['layers']
    assert S <= P, "sequence length exceeds max position embeddings"
    M = B * S

    ids = input_ids.reshape(M, 1).astype(jnp.int32)
    mask_bias = (1.0 - attention_mask.astype(jnp.float32)) * (-1e9)   # (B, S)
    bias_z = jnp.tile(mask_bias, (NH, 1))                             # (NH*B, S), z = h*B + b
    kw = keyword_count.reshape(B, 1).astype(jnp.float32)

    inputs = (ids, bias_z, kw,
              params['word_emb'], params['pos_emb'], params['type_row'],
              params['emb_ln_g'], params['emb_ln_b'],
              params['wqkv'], params['bqkv'], params['wo'], params['bo'],
              params['ln1_g'], params['ln1_b'],
              params['wi'], params['bi'], params['wf'], params['bf'],
              params['ln2_g'], params['ln2_b'],
              params['pool_w'], params['pool_b'],
              params['reg_w1a'], params['reg_w1b'], params['reg_b1'],
              params['reg_w2'], params['reg_b2'])

    in_specs = [
        _rep_spec((M, 1)), _rep_spec((NH * B, S)), _rep_spec((B, 1)),
        _rep_spec((V, H)), _rep_spec((P, H)), _rep_spec((1, H)),
        _rep_spec((1, H)), _rep_spec((1, H)),
        _layer_spec((H, 3 * H)), _layer_spec((1, 3 * H)),
        _layer_spec((H, H)), _layer_spec((1, H)),
        _layer_spec((1, H)), _layer_spec((1, H)),
        _layer_spec((H, I)), _layer_spec((1, I)),
        _layer_spec((I, H)), _layer_spec((1, H)),
        _layer_spec((1, H)), _layer_spec((1, H)),
        _rep_spec((H, H)), _rep_spec((1, H)),
        _rep_spec((H, 128)), _rep_spec((1, 128)), _rep_spec((1, 128)),
        _rep_spec((128, 1)), _rep_spec((1, 1)),
    ]

    kernel = functools.partial(_bert_kernel, B=B, S=S, NH=NH)
    return pl.pallas_call(
        kernel,
        out_shape=jax.ShapeDtypeStruct((B, 1), jnp.float32),
        grid_spec=pltpu.PrefetchScalarGridSpec(
            num_scalar_prefetch=0,
            grid=(L,),
            in_specs=in_specs,
            out_specs=pl.BlockSpec((B, 1), lambda l: (0, 0)),
            scratch_shapes=[pltpu.VMEM((M, H), jnp.float32)],      # carried activations
        ),
        compiler_params=pltpu.CompilerParams(
            dimension_semantics=("arbitrary",)),                   # layer axis carries state
    )(*inputs)


# ----------------------------------------------------------------------------
# Deterministic parameter init (stands in for BertModel.from_pretrained).
# MXU-bound weights stored in bf16; biases / LayerNorm / VPU-path tensors in f32.
# Per-layer weights stacked on a leading L axis (streamed by the grid).
# ----------------------------------------------------------------------------
def init_params(key, cfg):
    H, I, V, L = cfg['hidden'], cfg['intermediate'], cfg['vocab'], cfg['layers']
    keys = iter(jax.random.split(key, 32))
    nk = lambda: next(keys)

    def normal(shape, dtype=jnp.bfloat16):
        return (jax.random.normal(nk(), shape, jnp.float32) * 0.02).astype(dtype)

    return dict(
        word_emb=normal((V, H)),                                 # bf16 MXU operand
        pos_emb=normal((cfg['max_pos'], H), jnp.float32),
        # TODO(synk): token_type_ids are not an input; segment-0 row only.
        type_row=normal((1, H), jnp.float32),
        emb_ln_g=jnp.ones((1, H), jnp.float32),
        emb_ln_b=jnp.zeros((1, H), jnp.float32),
        # encoder layers (stacked): fused QKV projection (H, 3H).
        wqkv=normal((L, H, 3 * H)),
        bqkv=jnp.zeros((L, 1, 3 * H), jnp.float32),
        wo=normal((L, H, H)),
        bo=jnp.zeros((L, 1, H), jnp.float32),
        ln1_g=jnp.ones((L, 1, H), jnp.float32),
        ln1_b=jnp.zeros((L, 1, H), jnp.float32),
        wi=normal((L, H, I)),
        bi=jnp.zeros((L, 1, I), jnp.float32),
        wf=normal((L, I, H)),
        bf=jnp.zeros((L, 1, H), jnp.float32),
        ln2_g=jnp.ones((L, 1, H), jnp.float32),
        ln2_b=jnp.zeros((L, 1, H), jnp.float32),
        pool_w=normal((H, H)),
        pool_b=jnp.zeros((1, H), jnp.float32),
        # regressor Linear(H+1, 128): hidden rows (H,128) bf16 + keyword row (1,128) f32.
        reg_w1a=normal((H, 128)),
        reg_w1b=normal((1, 128), jnp.float32),
        reg_b1=jnp.zeros((1, 128), jnp.float32),
        reg_w2=normal((128, 1)),
        reg_b2=jnp.zeros((1, 1), jnp.float32),
    )


# ----------------------------------------------------------------------------
if __name__ == "__main__":
    B, S = 2, 8
    params = init_params(jax.random.PRNGKey(0), CFG)

    k1, k2 = jax.random.split(jax.random.PRNGKey(0))
    input_ids = jax.random.randint(k1, (B, S), 0, CFG['vocab'], dtype=jnp.int32)
    attention_mask = jnp.array([[1, 1, 1, 1, 1, 1, 1, 1],
                                [1, 1, 1, 1, 1, 1, 0, 0]], dtype=jnp.float32)
    keyword_count = jax.random.uniform(k2, (B,), jnp.float32) * 5.0

    fwd = jax.jit(bert_regressor_forward)
    out = jax.block_until_ready(fwd(params, input_ids, attention_mask, keyword_count))

    assert out.shape == (B, 1) and out.dtype == jnp.float32
    assert bool(jnp.all(jnp.isfinite(out)))
    print("KERNEL_OK")
</pallas_src>

<mosaic_0001>
module attributes {stable_mosaic.version = 11 : i64} {
  func.func @_bert_kernel(%arg0: i32, %arg1: memref<16x1xi32, #tpu.memory_space<vmem>>, %arg2: memref<4x8xf32, #tpu.memory_space<vmem>>, %arg3: memref<2x1xf32, #tpu.memory_space<vmem>>, %arg4: memref<100x32xbf16, #tpu.memory_space<vmem>>, %arg5: memref<16x32xf32, #tpu.memory_space<vmem>>, %arg6: memref<1x32xf32, #tpu.memory_space<vmem>>, %arg7: memref<1x32xf32, #tpu.memory_space<vmem>>, %arg8: memref<1x32xf32, #tpu.memory_space<vmem>>, %arg9: memref<1x32x96xbf16, #tpu.memory_space<vmem>>, %arg10: memref<1x1x96xf32, #tpu.memory_space<vmem>>, %arg11: memref<1x32x32xbf16, #tpu.memory_space<vmem>>, %arg12: memref<1x1x32xf32, #tpu.memory_space<vmem>>, %arg13: memref<1x1x32xf32, #tpu.memory_space<vmem>>, %arg14: memref<1x1x32xf32, #tpu.memory_space<vmem>>, %arg15: memref<1x32x64xbf16, #tpu.memory_space<vmem>>, %arg16: memref<1x1x64xf32, #tpu.memory_space<vmem>>, %arg17: memref<1x64x32xbf16, #tpu.memory_space<vmem>>, %arg18: memref<1x1x32xf32, #tpu.memory_space<vmem>>, %arg19: memref<1x1x32xf32, #tpu.memory_space<vmem>>, %arg20: memref<1x1x32xf32, #tpu.memory_space<vmem>>, %arg21: memref<32x32xbf16, #tpu.memory_space<vmem>>, %arg22: memref<1x32xf32, #tpu.memory_space<vmem>>, %arg23: memref<32x128xbf16, #tpu.memory_space<vmem>>, %arg24: memref<1x128xf32, #tpu.memory_space<vmem>>, %arg25: memref<1x128xf32, #tpu.memory_space<vmem>>, %arg26: memref<128x1xbf16, #tpu.memory_space<vmem>>, %arg27: memref<1x1xf32, #tpu.memory_space<vmem>>, %arg28: memref<2x1xf32, #tpu.memory_space<vmem>>, %arg29: memref<16x32xf32, #tpu.memory_space<vmem>>) attributes {dimension_semantics = [#tpu.dimension_semantics<arbitrary>], iteration_bounds = array<i64: 2>, scalar_prefetch = 0 : i64, scratch_operands = 1 : i64, tpu.core_type = #tpu.core_type<tc>, window_params = [{pipeline_mode = #tpu.pipeline_mode<synchronous>, transform_indices = @transform_0, window_bounds = array<i64: 16, 1>}, {pipeline_mode = #tpu.pipeline_mode<synchronous>, transform_indices = @transform_1, window_bounds = array<i64: 4, 8>}, {pipeline_mode = #tpu.pipeline_mode<synchronous>, transform_indices = @transform_2, window_bounds = array<i64: 2, 1>}, {pipeline_mode = #tpu.pipeline_mode<synchronous>, transform_indices = @transform_3, window_bounds = array<i64: 100, 32>}, {pipeline_mode = #tpu.pipeline_mode<synchronous>, transform_indices = @transform_4, window_bounds = array<i64: 16, 32>}, {pipeline_mode = #tpu.pipeline_mode<synchronous>, transform_indices = @transform_5, window_bounds = array<i64: 1, 32>}, {pipeline_mode = #tpu.pipeline_mode<synchronous>, transform_indices = @transform_6, window_bounds = array<i64: 1, 32>}, {pipeline_mode = #tpu.pipeline_mode<synchronous>, transform_indices = @transform_7, window_bounds = array<i64: 1, 32>}, {transform_indices = @transform_8, window_bounds = array<i64: 1, 32, 96>}, {transform_indices = @transform_9, window_bounds = array<i64: 1, 1, 96>}, {transform_indices = @transform_10, window_bounds = array<i64: 1, 32, 32>}, {transform_indices = @transform_11, window_bounds = array<i64: 1, 1, 32>}, {transform_indices = @transform_12, window_bounds = array<i64: 1, 1, 32>}, {transform_indices = @transform_13, window_bounds = array<i64: 1, 1, 32>}, {transform_indices = @transform_14, window_bounds = array<i64: 1, 32, 64>}, {transform_indices = @transform_15, window_bounds = array<i64: 1, 1, 64>}, {transform_indices = @transform_16, window_bounds = array<i64: 1, 64, 32>}, {transform_indices = @transform_17, window_bounds = array<i64: 1, 1, 32>}, {transform_indices = @transform_18, window_bounds = array<i64: 1, 1, 32>}, {transform_indices = @transform_19, window_bounds = array<i64: 1, 1, 32>}, {pipeline_mode = #tpu.pipeline_mode<synchronous>, transform_indices = @transform_20, window_bounds = array<i64: 32, 32>}, {pipeline_mode = #tpu.pipeline_mode<synchronous>, transform_indices = @transform_21, window_bounds = array<i64: 1, 32>}, {pipeline_mode = #tpu.pipeline_mode<synchronous>, transform_indices = @transform_22, window_bounds = array<i64: 32, 128>}, {pipeline_mode = #tpu.pipeline_mode<synchronous>, transform_indices = @transform_23, window_bounds = array<i64: 1, 128>}, {pipeline_mode = #tpu.pipeline_mode<synchronous>, transform_indices = @transform_24, window_bounds = array<i64: 1, 128>}, {pipeline_mode = #tpu.pipeline_mode<synchronous>, transform_indices = @transform_25, window_bounds = array<i64: 128, 1>}, {pipeline_mode = #tpu.pipeline_mode<synchronous>, transform_indices = @transform_26, window_bounds = array<i64: 1, 1>}, {pipeline_mode = #tpu.pipeline_mode<synchronous>, transform_indices = @transform_27, window_bounds = array<i64: 2, 1>}]} {
    %c0_i32 = arith.constant 0 : i32
    %0 = arith.cmpi eq, %arg0, %c0_i32 : i32
    %1 = arith.extui %0 : i1 to i32
    %c0_i32_0 = arith.constant 0 : i32
    %2 = arith.cmpi ne, %1, %c0_i32_0 : i32
    scf.if %2 {
      %c0_65 = arith.constant 0 : index
      %c0_66 = arith.constant 0 : index
      %147 = vector.load %arg1[%c0_65, %c0_66] : memref<16x1xi32, #tpu.memory_space<vmem>>, vector<16x1xi32>
      %148 = tpu.iota {dimensions = array<i32: 1>} : vector<16x100xi32>
      %149 = vector.broadcast %147 : vector<16x1xi32> to vector<16x100xi32>
      %150 = arith.cmpi eq, %148, %149 : vector<16x100xi32>
      %151 = arith.extui %150 : vector<16x100xi1> to vector<16x100xi32>
      %152 = arith.sitofp %151 : vector<16x100xi32> to vector<16x100xf32>
      %153 = arith.truncf %152 : vector<16x100xf32> to vector<16x100xbf16>
      %c0_67 = arith.constant 0 : index
      %c0_68 = arith.constant 0 : index
      %154 = vector.load %arg4[%c0_67, %c0_68] : memref<100x32xbf16, #tpu.memory_space<vmem>>, vector<100x32xbf16>
      %cst_69 = arith.constant dense<0.000000e+00> : vector<16x32xf32>
      %155 = tpu.matmul %153, %154, %cst_69 {dimension_numbers = #tpu.dot_dimension_numbers<[1], [0], [0], [1], [0, 0, 1, 1], [], []>} : vector<16x100xbf16>, vector<100x32xbf16>, vector<16x32xf32> -> vector<16x32xf32>
      %c0_70 = arith.constant 0 : index
      %c0_71 = arith.constant 0 : index
      %156 = vector.load %arg5[%c0_70, %c0_71] : memref<16x32xf32, #tpu.memory_space<vmem>>, vector<16x32xf32>
      %157 = vector.extract_strided_slice %156 {offsets = [0, 0], sizes = [8, 32], strides = [1, 1]} : vector<16x32xf32> to vector<8x32xf32>
      %c0_72 = arith.constant 0 : index
      %c0_73 = arith.constant 0 : index
      %158 = vector.load %arg6[%c0_72, %c0_73] : memref<1x32xf32, #tpu.memory_space<vmem>>, vector<1x32xf32>
      %159 = vector.shape_cast %155 : vector<16x32xf32> to vector<2x8x32xf32>
      %160 = vector.shape_cast %157 : vector<8x32xf32> to vector<1x8x32xf32>
      %161 = vector.broadcast %160 : vector<1x8x32xf32> to vector<2x8x32xf32>
      %162 = arith.addf %159, %161 : vector<2x8x32xf32>
      %163 = vector.shape_cast %158 : vector<1x32xf32> to vector<1x1x32xf32>
      %164 = vector.broadcast %163 : vector<1x1x32xf32> to vector<2x8x32xf32>
      %165 = arith.addf %162, %164 : vector<2x8x32xf32>
      %166 = vector.shape_cast %165 : vector<2x8x32xf32> to vector<16x32xf32>
      %c0_74 = arith.constant 0 : index
      %c0_75 = arith.constant 0 : index
      %167 = vector.load %arg7[%c0_74, %c0_75] : memref<1x32xf32, #tpu.memory_space<vmem>>, vector<1x32xf32>
      %c0_76 = arith.constant 0 : index
      %c0_77 = arith.constant 0 : index
      %168 = vector.load %arg8[%c0_76, %c0_77] : memref<1x32xf32, #tpu.memory_space<vmem>>, vector<1x32xf32>
      %cst_78 = arith.constant dense<0.000000e+00> : vector<16xf32>
      %169 = vector.multi_reduction <add>, %166, %cst_78 [1] : vector<16x32xf32> to vector<16xf32>
      %170 = vector.shape_cast %169 : vector<16xf32> to vector<16x1xf32>
      %cst_79 = arith.constant 3.200000e+01 : f32
      %171 = vector.broadcast %cst_79 : f32 to vector<16x1xf32>
      %172 = arith.divf %170, %171 : vector<16x1xf32>
      %173 = vector.broadcast %172 : vector<16x1xf32> to vector<16x32xf32>
      %174 = arith.subf %166, %173 : vector<16x32xf32>
      %175 = arith.mulf %174, %174 : vector<16x32xf32>
      %cst_80 = arith.constant dense<0.000000e+00> : vector<16xf32>
      %176 = vector.multi_reduction <add>, %175, %cst_80 [1] : vector<16x32xf32> to vector<16xf32>
      %177 = vector.shape_cast %176 : vector<16xf32> to vector<16x1xf32>
      %cst_81 = arith.constant 3.200000e+01 : f32
      %178 = vector.broadcast %cst_81 : f32 to vector<16x1xf32>
      %179 = arith.divf %177, %178 : vector<16x1xf32>
      %180 = vector.broadcast %172 : vector<16x1xf32> to vector<16x32xf32>
      %181 = arith.subf %166, %180 : vector<16x32xf32>
      %cst_82 = arith.constant 9.99999996E-13 : f32
      %182 = vector.broadcast %cst_82 : f32 to vector<16x1xf32>
      %183 = arith.addf %179, %182 : vector<16x1xf32>
      %184 = math.rsqrt %183 : vector<16x1xf32>
      %185 = vector.broadcast %184 : vector<16x1xf32> to vector<16x32xf32>
      %186 = arith.mulf %181, %185 : vector<16x32xf32>
      %187 = vector.broadcast %167 : vector<1x32xf32> to vector<16x32xf32>
      %188 = arith.mulf %186, %187 : vector<16x32xf32>
      %189 = vector.broadcast %168 : vector<1x32xf32> to vector<16x32xf32>
      %190 = arith.addf %188, %189 : vector<16x32xf32>
      %c0_83 = arith.constant 0 : index
      %c0_84 = arith.constant 0 : index
      %191 = vector.load %arg29[%c0_83, %c0_84] : memref<16x32xf32, #tpu.memory_space<vmem>>, vector<16x32xf32>
      tpu.vector_store %arg29[%c0_83, %c0_84], %190 {strides = array<i32>} : memref<16x32xf32, #tpu.memory_space<vmem>>, vector<16x32xf32>,
    } else {
    }
    %c0 = arith.constant 0 : index
    %c0_1 = arith.constant 0 : index
    %3 = vector.load %arg29[%c0, %c0_1] : memref<16x32xf32, #tpu.memory_space<vmem>>, vector<16x32xf32>
    %4 = arith.truncf %3 : vector<16x32xf32> to vector<16x32xbf16>
    %c0_2 = arith.constant 0 : index
    %c0_3 = arith.constant 0 : index
    %5 = vector.load %arg2[%c0_2, %c0_3] : memref<4x8xf32, #tpu.memory_space<vmem>>, vector<4x8xf32>
    %6 = vector.shape_cast %5 : vector<4x8xf32> to vector<4x1x8xf32>
    %c0_4 = arith.constant 0 : index
    %c0_5 = arith.constant 0 : index
    %c0_6 = arith.constant 0 : index
    %7 = vector.load %arg9[%c0_4, %c0_5, %c0_6] : memref<1x32x96xbf16, #tpu.memory_space<vmem>>, vector<1x32x96xbf16>
    %8 = vector.shape_cast %7 : vector<1x32x96xbf16> to vector<32x96xbf16>
    %cst = arith.constant dense<0.000000e+00> : vector<16x96xf32>
    %9 = tpu.matmul %4, %8, %cst {dimension_numbers = #tpu.dot_dimension_numbers<[1], [0], [0], [1], [0, 0, 1, 1], [], []>} : vector<16x32xbf16>, vector<32x96xbf16>, vector<16x96xf32> -> vector<16x96xf32>
    %c0_7 = arith.constant 0 : index
    %c0_8 = arith.constant 0 : index
    %c0_9 = arith.constant 0 : index
    %10 = vector.load %arg10[%c0_7, %c0_8, %c0_9] : memref<1x1x96xf32, #tpu.memory_space<vmem>>, vector<1x1x96xf32>
    %11 = vector.shape_cast %10 : vector<1x1x96xf32> to vector<1x96xf32>
    %12 = vector.broadcast %11 : vector<1x96xf32> to vector<16x96xf32>
    %13 = arith.addf %9, %12 : vector<16x96xf32>
    %14 = arith.truncf %13 : vector<16x96xf32> to vector<16x96xbf16>
    %15 = vector.extract_strided_slice %14 {offsets = [0, 0], sizes = [16, 16], strides = [1, 1]} : vector<16x96xbf16> to vector<16x16xbf16>
    %16 = vector.shape_cast %15 : vector<16x16xbf16> to vector<2x8x16xbf16>
    %17 = vector.extract_strided_slice %14 {offsets = [0, 16], sizes = [16, 16], strides = [1, 1]} : vector<16x96xbf16> to vector<16x16xbf16>
    %18 = vector.shape_cast %17 : vector<16x16xbf16> to vector<2x8x16xbf16>
    %19 = tpu.concatenate %16, %18 in 0 : vector<2x8x16xbf16>, vector<2x8x16xbf16> -> vector<4x8x16xbf16>
    %20 = vector.extract_strided_slice %14 {offsets = [0, 32], sizes = [16, 16], strides = [1, 1]} : vector<16x96xbf16> to vector<16x16xbf16>
    %21 = vector.shape_cast %20 : vector<16x16xbf16> to vector<2x8x16xbf16>
    %22 = vector.extract_strided_slice %14 {offsets = [0, 48], sizes = [16, 16], strides = [1, 1]} : vector<16x96xbf16> to vector<16x16xbf16>
    %23 = vector.shape_cast %22 : vector<16x16xbf16> to vector<2x8x16xbf16>
    %24 = tpu.concatenate %21, %23 in 0 : vector<2x8x16xbf16>, vector<2x8x16xbf16> -> vector<4x8x16xbf16>
    %25 = vector.extract_strided_slice %14 {offsets = [0, 64], sizes = [16, 16], strides = [1, 1]} : vector<16x96xbf16> to vector<16x16xbf16>
    %26 = vector.shape_cast %25 : vector<16x16xbf16> to vector<2x8x16xbf16>
    %27 = vector.extract_strided_slice %14 {offsets = [0, 80], sizes = [16, 16], strides = [1, 1]} : vector<16x96xbf16> to vector<16x16xbf16>
    %28 = vector.shape_cast %27 : vector<16x16xbf16> to vector<2x8x16xbf16>
    %29 = tpu.concatenate %26, %28 in 0 : vector<2x8x16xbf16>, vector<2x8x16xbf16> -> vector<4x8x16xbf16>
    "tpu.trace_start"() <{level = 10 : i32, message = "zqd,zkd->zqk"}> : () -> ()
    %cst_10 = arith.constant dense<0.000000e+00> : vector<4x8x8xf32>
    %30 = tpu.matmul %19, %24, %cst_10 {dimension_numbers = #tpu.dot_dimension_numbers<[2], [2], [1], [1], [0, 0, 0, 1, 1, 1], [0], [0]>} : vector<4x8x16xbf16>, vector<4x8x16xbf16>, vector<4x8x8xf32> -> vector<4x8x8xf32>
    "tpu.trace_stop"() : () -> ()
    %cst_11 = arith.constant 2.500000e-01 : f32
    %31 = vector.broadcast %cst_11 : f32 to vector<4x8x8xf32>
    %32 = arith.mulf %30, %31 : vector<4x8x8xf32>
    %33 = vector.broadcast %6 : vector<4x1x8xf32> to vector<4x8x8xf32>
    %34 = arith.addf %32, %33 : vector<4x8x8xf32>
    %cst_12 = arith.constant dense<0xFF800000> : vector<4x8xf32>
    %35 = vector.multi_reduction <maximumf>, %34, %cst_12 [2] : vector<4x8x8xf32> to vector<4x8xf32>
    %36 = vector.shape_cast %35 : vector<4x8xf32> to vector<4x8x1xf32>
    %37 = vector.broadcast %36 : vector<4x8x1xf32> to vector<4x8x8xf32>
    %38 = arith.subf %34, %37 : vector<4x8x8xf32>
    %39 = math.exp %38 : vector<4x8x8xf32>
    %cst_13 = arith.constant dense<0.000000e+00> : vector<4x8xf32>
    %40 = vector.multi_reduction <add>, %39, %cst_13 [2] : vector<4x8x8xf32> to vector<4x8xf32>
    %41 = vector.shape_cast %40 : vector<4x8xf32> to vector<4x8x1xf32>
    %42 = tpu.reciprocal %41 {approx = true} : vector<4x8x1xf32> -> vector<4x8x1xf32>
    %43 = vector.broadcast %42 : vector<4x8x1xf32> to vector<4x8x8xf32>
    %44 = arith.mulf %39, %43 : vector<4x8x8xf32>
    %45 = arith.truncf %44 : vector<4x8x8xf32> to vector<4x8x8xbf16>
    "tpu.trace_start"() <{level = 10 : i32, message = "zqk,zkd->zqd"}> : () -> ()
    %cst_14 = arith.constant dense<0.000000e+00> : vector<4x8x16xf32>
    %46 = tpu.matmul %45, %29, %cst_14 {dimension_numbers = #tpu.dot_dimension_numbers<[2], [1], [1], [2], [0, 0, 0, 1, 1, 2], [0], [0]>} : vector<4x8x8xbf16>, vector<4x8x16xbf16>, vector<4x8x16xf32> -> vector<4x8x16xf32>
    "tpu.trace_stop"() : () -> ()
    %47 = vector.extract_strided_slice %46 {offsets = [0, 0, 0], sizes = [2, 8, 16], strides = [1, 1, 1]} : vector<4x8x16xf32> to vector<2x8x16xf32>
    %48 = vector.shape_cast %47 : vector<2x8x16xf32> to vector<16x16xf32>
    %49 = vector.extract_strided_slice %46 {offsets = [2, 0, 0], sizes = [2, 8, 16], strides = [1, 1, 1]} : vector<4x8x16xf32> to vector<2x8x16xf32>
    %50 = vector.shape_cast %49 : vector<2x8x16xf32> to vector<16x16xf32>
    %51 = tpu.concatenate %48, %50 in 1 : vector<16x16xf32>, vector<16x16xf32> -> vector<16x32xf32>
    %52 = arith.truncf %51 : vector<16x32xf32> to vector<16x32xbf16>
    %c0_15 = arith.constant 0 : index
    %c0_16 = arith.constant 0 : index
    %c0_17 = arith.constant 0 : index
    %53 = vector.load %arg11[%c0_15, %c0_16, %c0_17] : memref<1x32x32xbf16, #tpu.memory_space<vmem>>, vector<1x32x32xbf16>
    %54 = vector.shape_cast %53 : vector<1x32x32xbf16> to vector<32x32xbf16>
    %cst_18 = arith.constant dense<0.000000e+00> : vector<16x32xf32>
    %55 = tpu.matmul %52, %54, %cst_18 {dimension_numbers = #tpu.dot_dimension_numbers<[1], [0], [0], [1], [0, 0, 1, 1], [], []>} : vector<16x32xbf16>, vector<32x32xbf16>, vector<16x32xf32> -> vector<16x32xf32>
    %c0_19 = arith.constant 0 : index
    %c0_20 = arith.constant 0 : index
    %c0_21 = arith.constant 0 : index
    %56 = vector.load %arg12[%c0_19, %c0_20, %c0_21] : memref<1x1x32xf32, #tpu.memory_space<vmem>>, vector<1x1x32xf32>
    %57 = vector.shape_cast %56 : vector<1x1x32xf32> to vector<1x32xf32>
    %58 = vector.broadcast %57 : vector<1x32xf32> to vector<16x32xf32>
    %59 = arith.addf %55, %58 : vector<16x32xf32>
    %60 = arith.addf %59, %3 : vector<16x32xf32>
    %c0_22 = arith.constant 0 : index
    %c0_23 = arith.constant 0 : index
    %c0_24 = arith.constant 0 : index
    %61 = vector.load %arg13[%c0_22, %c0_23, %c0_24] : memref<1x1x32xf32, #tpu.memory_space<vmem>>, vector<1x1x32xf32>
    %62 = vector.shape_cast %61 : vector<1x1x32xf32> to vector<1x32xf32>
    %c0_25 = arith.constant 0 : index
    %c0_26 = arith.constant 0 : index
    %c0_27 = arith.constant 0 : index
    %63 = vector.load %arg14[%c0_25, %c0_26, %c0_27] : memref<1x1x32xf32, #tpu.memory_space<vmem>>, vector<1x1x32xf32>
    %64 = vector.shape_cast %63 : vector<1x1x32xf32> to vector<1x32xf32>
    %cst_28 = arith.constant dense<0.000000e+00> : vector<16xf32>
    %65 = vector.multi_reduction <add>, %60, %cst_28 [1] : vector<16x32xf32> to vector<16xf32>
    %66 = vector.shape_cast %65 : vector<16xf32> to vector<16x1xf32>
    %cst_29 = arith.constant 3.200000e+01 : f32
    %67 = vector.broadcast %cst_29 : f32 to vector<16x1xf32>
    %68 = arith.divf %66, %67 : vector<16x1xf32>
    %69 = vector.broadcast %68 : vector<16x1xf32> to vector<16x32xf32>
    %70 = arith.subf %60, %69 : vector<16x32xf32>
    %71 = arith.mulf %70, %70 : vector<16x32xf32>
    %cst_30 = arith.constant dense<0.000000e+00> : vector<16xf32>
    %72 = vector.multi_reduction <add>, %71, %cst_30 [1] : vector<16x32xf32> to vector<16xf32>
    %73 = vector.shape_cast %72 : vector<16xf32> to vector<16x1xf32>
    %cst_31 = arith.constant 3.200000e+01 : f32
    %74 = vector.broadcast %cst_31 : f32 to vector<16x1xf32>
    %75 = arith.divf %73, %74 : vector<16x1xf32>
    %76 = vector.broadcast %68 : vector<16x1xf32> to vector<16x32xf32>
    %77 = arith.subf %60, %76 : vector<16x32xf32>
    %cst_32 = arith.constant 9.99999996E-13 : f32
    %78 = vector.broadcast %cst_32 : f32 to vector<16x1xf32>
    %79 = arith.addf %75, %78 : vector<16x1xf32>
    %80 = math.rsqrt %79 : vector<16x1xf32>
    %81 = vector.broadcast %80 : vector<16x1xf32> to vector<16x32xf32>
    %82 = arith.mulf %77, %81 : vector<16x32xf32>
    %83 = vector.broadcast %62 : vector<1x32xf32> to vector<16x32xf32>
    %84 = arith.mulf %82, %83 : vector<16x32xf32>
    %85 = vector.broadcast %64 : vector<1x32xf32> to vector<16x32xf32>
    %86 = arith.addf %84, %85 : vector<16x32xf32>
    %87 = arith.truncf %86 : vector<16x32xf32> to vector<16x32xbf16>
    %c0_33 = arith.constant 0 : index
    %c0_34 = arith.constant 0 : index
    %c0_35 = arith.constant 0 : index
    %88 = vector.load %arg15[%c0_33, %c0_34, %c0_35] : memref<1x32x64xbf16, #tpu.memory_space<vmem>>, vector<1x32x64xbf16>
    %89 = vector.shape_cast %88 : vector<1x32x64xbf16> to vector<32x64xbf16>
    %cst_36 = arith.constant dense<0.000000e+00> : vector<16x64xf32>
    %90 = tpu.matmul %87, %89, %cst_36 {dimension_numbers = #tpu.dot_dimension_numbers<[1], [0], [0], [1], [0, 0, 1, 1], [], []>} : vector<16x32xbf16>, vector<32x64xbf16>, vector<16x64xf32> -> vector<16x64xf32>
    %c0_37 = arith.constant 0 : index
    %c0_38 = arith.constant 0 : index
    %c0_39 = arith.constant 0 : index
    %91 = vector.load %arg16[%c0_37, %c0_38, %c0_39] : memref<1x1x64xf32, #tpu.memory_space<vmem>>, vector<1x1x64xf32>
    %92 = vector.shape_cast %91 : vector<1x1x64xf32> to vector<1x64xf32>
    %93 = vector.broadcast %92 : vector<1x64xf32> to vector<16x64xf32>
    %94 = arith.addf %90, %93 : vector<16x64xf32>
    %95 = arith.mulf %94, %94 : vector<16x64xf32>
    %96 = arith.mulf %94, %95 : vector<16x64xf32>
    %cst_40 = arith.constant 4.471500e-02 : f32
    %97 = vector.broadcast %cst_40 : f32 to vector<16x64xf32>
    %98 = arith.mulf %97, %96 : vector<16x64xf32>
    %99 = arith.addf %94, %98 : vector<16x64xf32>
    %cst_41 = arith.constant 0.797884583 : f32
    %100 = vector.broadcast %cst_41 : f32 to vector<16x64xf32>
    %101 = arith.mulf %100, %99 : vector<16x64xf32>
    %102 = math.tanh %101 : vector<16x64xf32>
    %cst_42 = arith.constant 1.000000e+00 : f32
    %103 = vector.broadcast %cst_42 : f32 to vector<16x64xf32>
    %104 = arith.addf %103, %102 : vector<16x64xf32>
    %cst_43 = arith.constant 5.000000e-01 : f32
    %105 = vector.broadcast %cst_43 : f32 to vector<16x64xf32>
    %106 = arith.mulf %105, %104 : vector<16x64xf32>
    %107 = arith.mulf %94, %106 : vector<16x64xf32>
    %108 = arith.truncf %107 : vector<16x64xf32> to vector<16x64xbf16>
    %c0_44 = arith.constant 0 : index
    %c0_45 = arith.constant 0 : index
    %c0_46 = arith.constant 0 : index
    %109 = vector.load %arg17[%c0_44, %c0_45, %c0_46] : memref<1x64x32xbf16, #tpu.memory_space<vmem>>, vector<1x64x32xbf16>
    %110 = vector.shape_cast %109 : vector<1x64x32xbf16> to vector<64x32xbf16>
    %cst_47 = arith.constant dense<0.000000e+00> : vector<16x32xf32>
    %111 = tpu.matmul %108, %110, %cst_47 {dimension_numbers = #tpu.dot_dimension_numbers<[1], [0], [0], [1], [0, 0, 1, 1], [], []>} : vector<16x64xbf16>, vector<64x32xbf16>, vector<16x32xf32> -> vector<16x32xf32>
    %c0_48 = arith.constant 0 : index
    %c0_49 = arith.constant 0 : index
    %c0_50 = arith.constant 0 : index
    %112 = vector.load %arg18[%c0_48, %c0_49, %c0_50] : memref<1x1x32xf32, #tpu.memory_space<vmem>>, vector<1x1x32xf32>
    %113 = vector.shape_cast %112 : vector<1x1x32xf32> to vector<1x32xf32>
    %114 = vector.broadcast %113 : vector<1x32xf32> to vector<16x32xf32>
    %115 = arith.addf %111, %114 : vector<16x32xf32>
    %116 = arith.addf %115, %86 : vector<16x32xf32>
    %c0_51 = arith.constant 0 : index
    %c0_52 = arith.constant 0 : index
    %c0_53 = arith.constant 0 : index
    %117 = vector.load %arg19[%c0_51, %c0_52, %c0_53] : memref<1x1x32xf32, #tpu.memory_space<vmem>>, vector<1x1x32xf32>
    %118 = vector.shape_cast %117 : vector<1x1x32xf32> to vector<1x32xf32>
    %c0_54 = arith.constant 0 : index
    %c0_55 = arith.constant 0 : index
    %c0_56 = arith.constant 0 : index
    %119 = vector.load %arg20[%c0_54, %c0_55, %c0_56] : memref<1x1x32xf32, #tpu.memory_space<vmem>>, vector<1x1x32xf32>
    %120 = vector.shape_cast %119 : vector<1x1x32xf32> to vector<1x32xf32>
    %cst_57 = arith.constant dense<0.000000e+00> : vector<16xf32>
    %121 = vector.multi_reduction <add>, %116, %cst_57 [1] : vector<16x32xf32> to vector<16xf32>
    %122 = vector.shape_cast %121 : vector<16xf32> to vector<16x1xf32>
    %cst_58 = arith.constant 3.200000e+01 : f32
    %123 = vector.broadcast %cst_58 : f32 to vector<16x1xf32>
    %124 = arith.divf %122, %123 : vector<16x1xf32>
    %125 = vector.broadcast %124 : vector<16x1xf32> to vector<16x32xf32>
    %126 = arith.subf %116, %125 : vector<16x32xf32>
    %127 = arith.mulf %126, %126 : vector<16x32xf32>
    %cst_59 = arith.constant dense<0.000000e+00> : vector<16xf32>
    %128 = vector.multi_reduction <add>, %127, %cst_59 [1] : vector<16x32xf32> to vector<16xf32>
    %129 = vector.shape_cast %128 : vector<16xf32> to vector<16x1xf32>
    %cst_60 = arith.constant 3.200000e+01 : f32
    %130 = vector.broadcast %cst_60 : f32 to vector<16x1xf32>
    %131 = arith.divf %129, %130 : vector<16x1xf32>
    %132 = vector.broadcast %124 : vector<16x1xf32> to vector<16x32xf32>
    %133 = arith.subf %116, %132 : vector<16x32xf32>
    %cst_61 = arith.constant 9.99999996E-13 : f32
    %134 = vector.broadcast %cst_61 : f32 to vector<16x1xf32>
    %135 = arith.addf %131, %134 : vector<16x1xf32>
    %136 = math.rsqrt %135 : vector<16x1xf32>
    %137 = vector.broadcast %136 : vector<16x1xf32> to vector<16x32xf32>
    %138 = arith.mulf %133, %137 : vector<16x32xf32>
    %139 = vector.broadcast %118 : vector<1x32xf32> to vector<16x32xf32>
    %140 = arith.mulf %138, %139 : vector<16x32xf32>
    %141 = vector.broadcast %120 : vector<1x32xf32> to vector<16x32xf32>
    %142 = arith.addf %140, %141 : vector<16x32xf32>
    %c0_62 = arith.constant 0 : index
    %c0_63 = arith.constant 0 : index
    %143 = vector.load %arg29[%c0_62, %c0_63] : memref<16x32xf32, #tpu.memory_space<vmem>>, vector<16x32xf32>
    tpu.vector_store %arg29[%c0_62, %c0_63], %142 {strides = array<i32>} : memref<16x32xf32, #tpu.memory_space<vmem>>, vector<16x32xf32>,
    %c1_i32 = arith.constant 1 : i32
    %144 = arith.cmpi eq, %arg0, %c1_i32 : i32
    %145 = arith.extui %144 : i1 to i32
    %c0_i32_64 = arith.constant 0 : i32
    %146 = arith.cmpi ne, %145, %c0_i32_64 : i32
    scf.if %146 {
      %147 = tpu.iota {dimensions = array<i32: 1>} : vector<2x16xi32>
      %148 = tpu.iota {dimensions = array<i32: 0>} : vector<2x16xi32>
      %c8_i32 = arith.constant 8 : i32
      %149 = vector.broadcast %c8_i32 : i32 to vector<2x16xi32>
      %150 = arith.muli %149, %148 : vector<2x16xi32>
      %151 = arith.cmpi eq, %147, %150 : vector<2x16xi32>
      %152 = arith.extui %151 : vector<2x16xi1> to vector<2x16xi32>
      %153 = arith.sitofp %152 : vector<2x16xi32> to vector<2x16xf32>
      %154 = arith.truncf %153 : vector<2x16xf32> to vector<2x16xbf16>
      %155 = arith.truncf %142 : vector<16x32xf32> to vector<16x32xbf16>
      %cst_65 = arith.constant dense<0.000000e+00> : vector<2x32xf32>
      %156 = tpu.matmul %154, %155, %cst_65 {dimension_numbers = #tpu.dot_dimension_numbers<[1], [0], [0], [1], [0, 0, 1, 1], [], []>} : vector<2x16xbf16>, vector<16x32xbf16>, vector<2x32xf32> -> vector<2x32xf32>
      %157 = arith.truncf %156 : vector<2x32xf32> to vector<2x32xbf16>
      %c0_66 = arith.constant 0 : index
      %c0_67 = arith.constant 0 : index
      %158 = vector.load %arg21[%c0_66, %c0_67] : memref<32x32xbf16, #tpu.memory_space<vmem>>, vector<32x32xbf16>
      %cst_68 = arith.constant dense<0.000000e+00> : vector<2x32xf32>
      %159 = tpu.matmul %157, %158, %cst_68 {dimension_numbers = #tpu.dot_dimension_numbers<[1], [0], [0], [1], [0, 0, 1, 1], [], []>} : vector<2x32xbf16>, vector<32x32xbf16>, vector<2x32xf32> -> vector<2x32xf32>
      %c0_69 = arith.constant 0 : index
      %c0_70 = arith.constant 0 : index
      %160 = vector.load %arg22[%c0_69, %c0_70] : memref<1x32xf32, #tpu.memory_space<vmem>>, vector<1x32xf32>
      %161 = vector.broadcast %160 : vector<1x32xf32> to vector<2x32xf32>
      %162 = arith.addf %159, %161 : vector<2x32xf32>
      %163 = math.tanh %162 : vector<2x32xf32>
      %164 = arith.truncf %163 : vector<2x32xf32> to vector<2x32xbf16>
      %c0_71 = arith.constant 0 : index
      %c0_72 = arith.constant 0 : index
      %165 = vector.load %arg23[%c0_71, %c0_72] : memref<32x128xbf16, #tpu.memory_space<vmem>>, vector<32x128xbf16>
      %cst_73 = arith.constant dense<0.000000e+00> : vector<2x128xf32>
      %166 = tpu.matmul %164, %165, %cst_73 {dimension_numbers = #tpu.dot_dimension_numbers<[1], [0], [0], [1], [0, 0, 1, 1], [], []>} : vector<2x32xbf16>, vector<32x128xbf16>, vector<2x128xf32> -> vector<2x128xf32>
      %c0_74 = arith.constant 0 : index
      %c0_75 = arith.constant 0 : index
      %167 = vector.load %arg3[%c0_74, %c0_75] : memref<2x1xf32, #tpu.memory_space<vmem>>, vector<2x1xf32>
      %c0_76 = arith.constant 0 : index
      %c0_77 = arith.constant 0 : index
      %168 = vector.load %arg24[%c0_76, %c0_77] : memref<1x128xf32, #tpu.memory_space<vmem>>, vector<1x128xf32>
      %169 = vector.broadcast %167 : vector<2x1xf32> to vector<2x128xf32>
      %170 = vector.broadcast %168 : vector<1x128xf32> to vector<2x128xf32>
      %171 = arith.mulf %169, %170 : vector<2x128xf32>
      %172 = arith.addf %166, %171 : vector<2x128xf32>
      %c0_78 = arith.constant 0 : index
      %c0_79 = arith.constant 0 : index
      %173 = vector.load %arg25[%c0_78, %c0_79] : memref<1x128xf32, #tpu.memory_space<vmem>>, vector<1x128xf32>
      %174 = vector.broadcast %173 : vector<1x128xf32> to vector<2x128xf32>
      %175 = arith.addf %172, %174 : vector<2x128xf32>
      %176 = arith.truncf %175 : vector<2x128xf32> to vector<2x128xbf16>
      %c0_80 = arith.constant 0 : index
      %c0_81 = arith.constant 0 : index
      %177 = vector.load %arg26[%c0_80, %c0_81] : memref<128x1xbf16, #tpu.memory_space<vmem>>, vector<128x1xbf16>
      %cst_82 = arith.constant dense<0.000000e+00> : vector<2x1xf32>
      %178 = tpu.matmul %176, %177, %cst_82 {dimension_numbers = #tpu.dot_dimension_numbers<[1], [0], [0], [1], [0, 0, 1, 1], [], []>} : vector<2x128xbf16>, vector<128x1xbf16>, vector<2x1xf32> -> vector<2x1xf32>
      %c0_83 = arith.constant 0 : index
      %c0_84 = arith.constant 0 : index
      %179 = vector.load %arg27[%c0_83, %c0_84] : memref<1x1xf32, #tpu.memory_space<vmem>>, vector<1x1xf32>
      %180 = vector.broadcast %179 : vector<1x1xf32> to vector<2x1xf32>
      %181 = arith.addf %178, %180 : vector<2x1xf32>
      %c0_85 = arith.constant 0 : index
      %c0_86 = arith.constant 0 : index
      %182 = vector.load %arg28[%c0_85, %c0_86] : memref<2x1xf32, #tpu.memory_space<vmem>>, vector<2x1xf32>
      tpu.vector_store %arg28[%c0_85, %c0_86], %181 {strides = array<i32>} : memref<2x1xf32, #tpu.memory_space<vmem>>, vector<2x1xf32>,
    } else {
    }
    return
  }
  func.func @transform_0(%arg0: i32) -> (i32, i32) {
    %c0_i32 = arith.constant 0 : i32
    %c0_i32_0 = arith.constant 0 : i32
    %c0_i32_1 = arith.constant 0 : i32
    return %c0_i32, %c0_i32_0 : i32, i32
  }
  func.func @transform_1(%arg0: i32) -> (i32, i32) {
    %c0_i32 = arith.constant 0 : i32
    %c0_i32_0 = arith.constant 0 : i32
    %c0_i32_1 = arith.constant 0 : i32
    return %c0_i32, %c0_i32_0 : i32, i32
  }
  func.func @transform_2(%arg0: i32) -> (i32, i32) {
    %c0_i32 = arith.constant 0 : i32
    %c0_i32_0 = arith.constant 0 : i32
    %c0_i32_1 = arith.constant 0 : i32
    return %c0_i32, %c0_i32_0 : i32, i32
  }
  func.func @transform_3(%arg0: i32) -> (i32, i32) {
    %c0_i32 = arith.constant 0 : i32
    %c0_i32_0 = arith.constant 0 : i32
    %c0_i32_1 = arith.constant 0 : i32
    return %c0_i32, %c0_i32_0 : i32, i32
  }
  func.func @transform_4(%arg0: i32) -> (i32, i32) {
    %c0_i32 = arith.constant 0 : i32
    %c0_i32_0 = arith.constant 0 : i32
    %c0_i32_1 = arith.constant 0 : i32
    return %c0_i32, %c0_i32_0 : i32, i32
  }
  func.func @transform_5(%arg0: i32) -> (i32, i32) {
    %c0_i32 = arith.constant 0 : i32
    %c0_i32_0 = arith.constant 0 : i32
    %c0_i32_1 = arith.constant 0 : i32
    return %c0_i32, %c0_i32_0 : i32, i32
  }
  func.func @transform_6(%arg0: i32) -> (i32, i32) {
    %c0_i32 = arith.constant 0 : i32
    %c0_i32_0 = arith.constant 0 : i32
    %c0_i32_1 = arith.constant 0 : i32
    return %c0_i32, %c0_i32_0 : i32, i32
  }
  func.func @transform_7(%arg0: i32) -> (i32, i32) {
    %c0_i32 = arith.constant 0 : i32
    %c0_i32_0 = arith.constant 0 : i32
    %c0_i32_1 = arith.constant 0 : i32
    return %c0_i32, %c0_i32_0 : i32, i32
  }
  func.func @transform_8(%arg0: i32) -> (i32, i32, i32) {
    %c0_i32 = arith.constant 0 : i32
    %c0_i32_0 = arith.constant 0 : i32
    %c0_i32_1 = arith.constant 0 : i32
    return %arg0, %c0_i32, %c0_i32_0 : i32, i32, i32
  }
  func.func @transform_9(%arg0: i32) -> (i32, i32, i32) {
    %c0_i32 = arith.constant 0 : i32
    %c0_i32_0 = arith.constant 0 : i32
    %c0_i32_1 = arith.constant 0 : i32
    return %arg0, %c0_i32, %c0_i32_0 : i32, i32, i32
  }
  func.func @transform_10(%arg0: i32) -> (i32, i32, i32) {
    %c0_i32 = arith.constant 0 : i32
    %c0_i32_0 = arith.constant 0 : i32
    %c0_i32_1 = arith.constant 0 : i32
    return %arg0, %c0_i32, %c0_i32_0 : i32, i32, i32
  }
  func.func @transform_11(%arg0: i32) -> (i32, i32, i32) {
    %c0_i32 = arith.constant 0 : i32
    %c0_i32_0 = arith.constant 0 : i32
    %c0_i32_1 = arith.constant 0 : i32
    return %arg0, %c0_i32, %c0_i32_0 : i32, i32, i32
  }
  func.func @transform_12(%arg0: i32) -> (i32, i32, i32) {
    %c0_i32 = arith.constant 0 : i32
    %c0_i32_0 = arith.constant 0 : i32
    %c0_i32_1 = arith.constant 0 : i32
    return %arg0, %c0_i32, %c0_i32_0 : i32, i32, i32
  }
  func.func @transform_13(%arg0: i32) -> (i32, i32, i32) {
    %c0_i32 = arith.constant 0 : i32
    %c0_i32_0 = arith.constant 0 : i32
    %c0_i32_1 = arith.constant 0 : i32
    return %arg0, %c0_i32, %c0_i32_0 : i32, i32, i32
  }
  func.func @transform_14(%arg0: i32) -> (i32, i32, i32) {
    %c0_i32 = arith.constant 0 : i32
    %c0_i32_0 = arith.constant 0 : i32
    %c0_i32_1 = arith.constant 0 : i32
    return %arg0, %c0_i32, %c0_i32_0 : i32, i32, i32
  }
  func.func @transform_15(%arg0: i32) -> (i32, i32, i32) {
    %c0_i32 = arith.constant 0 : i32
    %c0_i32_0 = arith.constant 0 : i32
    %c0_i32_1 = arith.constant 0 : i32
    return %arg0, %c0_i32, %c0_i32_0 : i32, i32, i32
  }
  func.func @transform_16(%arg0: i32) -> (i32, i32, i32) {
    %c0_i32 = arith.constant 0 : i32
    %c0_i32_0 = arith.constant 0 : i32
    %c0_i32_1 = arith.constant 0 : i32
    return %arg0, %c0_i32, %c0_i32_0 : i32, i32, i32
  }
  func.func @transform_17(%arg0: i32) -> (i32, i32, i32) {
    %c0_i32 = arith.constant 0 : i32
    %c0_i32_0 = arith.constant 0 : i32
    %c0_i32_1 = arith.constant 0 : i32
    return %arg0, %c0_i32, %c0_i32_0 : i32, i32, i32
  }
  func.func @transform_18(%arg0: i32) -> (i32, i32, i32) {
    %c0_i32 = arith.constant 0 : i32
    %c0_i32_0 = arith.constant 0 : i32
    %c0_i32_1 = arith.constant 0 : i32
    return %arg0, %c0_i32, %c0_i32_0 : i32, i32, i32
  }
  func.func @transform_19(%arg0: i32) -> (i32, i32, i32) {
    %c0_i32 = arith.constant 0 : i32
    %c0_i32_0 = arith.constant 0 : i32
    %c0_i32_1 = arith.constant 0 : i32
    return %arg0, %c0_i32, %c0_i32_0 : i32, i32, i32
  }
  func.func @transform_20(%arg0: i32) -> (i32, i32) {
    %c0_i32 = arith.constant 0 : i32
    %c0_i32_0 = arith.constant 0 : i32
    %c0_i32_1 = arith.constant 0 : i32
    return %c0_i32, %c0_i32_0 : i32, i32
  }
  func.func @transform_21(%arg0: i32) -> (i32, i32) {
    %c0_i32 = arith.constant 0 : i32
    %c0_i32_0 = arith.constant 0 : i32
    %c0_i32_1 = arith.constant 0 : i32
    return %c0_i32, %c0_i32_0 : i32, i32
  }
  func.func @transform_22(%arg0: i32) -> (i32, i32) {
    %c0_i32 = arith.constant 0 : i32
    %c0_i32_0 = arith.constant 0 : i32
    %c0_i32_1 = arith.constant 0 : i32
    return %c0_i32, %c0_i32_0 : i32, i32
  }
  func.func @transform_23(%arg0: i32) -> (i32, i32) {
    %c0_i32 = arith.constant 0 : i32
    %c0_i32_0 = arith.constant 0 : i32
    %c0_i32_1 = arith.constant 0 : i32
    return %c0_i32, %c0_i32_0 : i32, i32
  }
  func.func @transform_24(%arg0: i32) -> (i32, i32) {
    %c0_i32 = arith.constant 0 : i32
    %c0_i32_0 = arith.constant 0 : i32
    %c0_i32_1 = arith.constant 0 : i32
    return %c0_i32, %c0_i32_0 : i32, i32
  }
  func.func @transform_25(%arg0: i32) -> (i32, i32) {
    %c0_i32 = arith.constant 0 : i32
    %c0_i32_0 = arith.constant 0 : i32
    %c0_i32_1 = arith.constant 0 : i32
    return %c0_i32, %c0_i32_0 : i32, i32
  }
  func.func @transform_26(%arg0: i32) -> (i32, i32) {
    %c0_i32 = arith.constant 0 : i32
    %c0_i32_0 = arith.constant 0 : i32
    %c0_i32_1 = arith.constant 0 : i32
    return %c0_i32, %c0_i32_0 : i32, i32
  }
  func.func @transform_27(%arg0: i32) -> (i32, i32) {
    %c0_i32 = arith.constant 0 : i32
    %c0_i32_0 = arith.constant 0 : i32
    %c0_i32_1 = arith.constant 0 : i32
    return %c0_i32, %c0_i32_0 : i32, i32
  }
}

</mosaic_0001>

<bundles_post_ra>
// kernel: bert_regressor_forward.1
= control target key start
LH: loop header
LB: loop body
LE: loop exit
PB: predicated region body
PF: predicated region fallthrough
CT: control target
= control target key end

     0   :  { %s2783_s0 = inlined_call_operand.vmem [shape: s32[16,1], index: 0, kind: input, shape index: {}]   ;;  %s2784_s1 = inlined_call_operand.vmem [shape: f32[4,8], index: 1, kind: input, shape index: {}]   ;;  %s2785_s2 = inlined_call_operand.vmem [shape: f32[2,1], index: 2, kind: input, shape index: {}]   ;;  %s2786_s3 = inlined_call_operand.vmem [shape: bf16[100,32], index: 3, kind: input, shape index: {}]   ;;  %s2787_s4 = inlined_call_operand.vmem [shape: f32[16,32], index: 4, kind: input, shape index: {}]   ;;  %s2788_s5 = inlined_call_operand.vmem [shape: f32[1,32], index: 5, kind: input, shape index: {}]   ;;  %s2789_s6 = inlined_call_operand.vmem [shape: f32[1,32], index: 6, kind: input, shape index: {}]   ;;  %s2790_s7 = inlined_call_operand.vmem [shape: f32[1,32], index: 7, kind: input, shape index: {}]   ;;  %s2791_s8 = inlined_call_operand.vmem [shape: bf16[2,32,96], index: 8, kind: input, shape index: {}]   ;;  %s2792_s9 = inlined_call_operand.vmem [shape: f32[2,1,96], index: 9, kind: input, shape index: {}]   ;;  %s2793_s10 = inlined_call_operand.vmem [shape: bf16[2,32,32], index: 10, kind: input, shape index: {}]   ;;  %s2794_s11 = inlined_call_operand.vmem [shape: f32[2,1,32], index: 11, kind: input, shape index: {}]   ;;  %s2795_s12 = inlined_call_operand.vmem [shape: f32[2,1,32], index: 12, kind: input, shape index: {}]   ;;  %s2796_s13 = inlined_call_operand.vmem [shape: f32[2,1,32], index: 13, kind: input, shape index: {}]   ;;  %s2797_s14 = inlined_call_operand.vmem [shape: bf16[2,32,64], index: 14, kind: input, shape index: {}]   ;;  %s2798_s15 = inlined_call_operand.vmem [shape: f32[2,1,64], index: 15, kind: input, shape index: {}]   ;;  %s2799_s16 = inlined_call_operand.vmem [shape: bf16[2,64,32], index: 16, kind: input, shape index: {}]   ;;  %s2800_s17 = inlined_call_operand.vmem [shape: f32[2,1,32], index: 17, kind: input, shape index: {}]   ;;  %s2801_s18 = inlined_call_operand.vmem [shape: f32[2,1,32], index: 18, kind: input, shape index: {}]   ;;  %s2802_s19 = inlined_call_operand.vmem [shape: f32[2,1,32], index: 19, kind: input, shape index: {}]   ;;  %s2803_s20 = inlined_call_operand.vmem [shape: bf16[32,32], index: 20, kind: input, shape index: {}]   ;;  %s2804_s21 = inlined_call_operand.vmem [shape: f32[1,32], index: 21, kind: input, shape index: {}]   ;;  %s2805_s22 = inlined_call_operand.vmem [shape: bf16[32,128], index: 22, kind: input, shape index: {}]   ;;  %s2806_s23 = inlined_call_operand.vmem [shape: f32[1,128], index: 23, kind: input, shape index: {}]   ;;  %s2807_s24 = inlined_call_operand.vmem [shape: f32[1,128], index: 24, kind: input, shape index: {}]   ;;  %s2808_s25 = inlined_call_operand.vmem [shape: bf16[128,1], index: 25, kind: input, shape index: {}]   ;;  %s2809_s26 = inlined_call_operand.<no memory space> [shape: f32[1,1], index: 26, kind: input, shape index: {}]   ;;  %s2810_s27 = inlined_call_operand.vmem [shape: f32[2,1], index: 27, kind: output, shape index: {}]  }
   0x1   :  { %2816 = sst [smem:[#allocation5_spill]] %s2783_s0  ;;  %v32_v0 = vstv %s2809_s26 }
   0x2   :  { %2817 = sst [smem:[#allocation6_spill]] %s2784_s1  ;;  %33 = vst [vmem:[#allocation3] sm:$0x1] %v32_v0 }
   0x3   :  { %2818 = sst [smem:[#allocation7_spill]] %s2785_s2 }
   0x4   :  { %2819 = sst [smem:[#allocation8_spill]] %s2786_s3 }
   0x5   :  { %2820 = sst [smem:[#allocation9_spill]] %s2787_s4 }
   0x6   :  { %2821 = sst [smem:[#allocation10_spill]] %s2788_s5 }
   0x7   :  { %2822 = sst [smem:[#allocation11_spill]] %s2789_s6 }
   0x8   :  { %2823 = sst [smem:[#allocation12_spill]] %s2790_s7 }
   0x9   :  { %2824 = sst [smem:[#allocation13_spill]] %s2791_s8  ;;  %s2485_s8 = smov 0  }
   0xa   :  { %2825 = sst [smem:[#allocation14_spill]] %s2792_s9 }
   0xb   :  { %2826 = sst [smem:[#allocation15_spill]] %s2793_s10 }
   0xc   :  { %2827 = sst [smem:[#allocation16_spill]] %s2794_s11 }
   0xd   :  { %2828 = sst [smem:[#allocation17_spill]] %s2804_s21 }
   0xe   :  { %2829 = sst [smem:[#allocation18_spill]] %s2805_s22 }
   0xf   :  { %2830 = sst [smem:[#allocation19_spill]] %s2806_s23 }
  0x10   :  { %2831 = sst [smem:[#allocation20_spill]] %s2807_s24 }
  0x11   :  { %2832 = sst [smem:[#allocation21_spill]] %s2808_s25 }
  0x12   :  { %2833 = sst [smem:[#allocation22_spill]] %s2810_s27 }
  0x13 LB: > { %2834 = sst [smem:[#allocation4_spill]] %s2330_s8  ;;  %s2491_s30 = sadd.s32 4294967295, %s2330_s8   ;;  %s2330_s8 = sphi %s2485_s8, %s39_s8  }
  0x14   : > { %p2070_p0 = scmp.ge.s32.totalorder %s2330_s8, 1  ;;  %p828_p1 = scmp.lt.s32.totalorder %s2330_s8, 3 }
  0x16   : > { %p829_p2 = pnand %p2070_p0, %p828_p1 }
  0x17   : > { %p934_p3 = scmp.lt.s32.totalorder (!%p829_p2), %s2491_s30, 1  ;;  %s2836_s6 = sld [smem:[#allocation13_spill]] (!%p829_p2) }
  0x18   : > { %832 = sbr.rel (%p829_p2) target bundleno = 3127 (0xc37), region = 128  ;;  %s2837_s7 = sld [smem:[#allocation15_spill]] (!%p829_p2) }
  0x19   : > { %s2838_s24 = sld [smem:[#allocation16_spill]] (!%p829_p2)  ;;  %p2079_p4 = scmp.ne.s32.totalorder (!%p829_p2), %s2491_s30, 0 }
  0x1d   : > { %s2497_s26 = scalar_select %p934_p3, %s2491_s30, 1 }
  0x1e   : > { %s2839_s27 = sld [smem:[#allocation5_spill]] (!%p2079_p4) }
  0x1f   : > { %s2214_s9 = sshll.u32 %s2497_s26, 4  ;;  %s949_s23 = scalar_lea.vmem %s2838_s24, %s2497_s26 }
  0x20   : > { %s2507_s11 = scalar_lea.vmem %s2836_s6, %s2214_s9  ;;  %s2512_s4 = scalar_lea.vmem %s2837_s7, %s2214_s9 }
  0x21   : > { %s2529_s6 = scalar_lea.vmem %s2797_s14, %s2214_s9  ;;  %s2217_s10 = sshll.u32 %s2497_s26, 5 }
  0x22   : > { %s2539_s8 = scalar_lea.vmem %s2799_s16, %s2217_s10  ;;  %s971_s5 = scalar_lea.vmem %s2800_s17, %s2497_s26 }
  0x23   : > { %s974_s29 = scalar_lea.vmem %s2801_s18, %s2497_s26  ;;  %s977_s22 = scalar_lea.vmem %s2802_s19, %s2497_s26 }
  0x24   : > { %982 = sbr.rel (%p2079_p4) target bundleno = 577 (0x241), region = 132  ;;  %s2840_s7 = sld [smem:[#allocation8_spill]] (!%p2079_p4) }
  0x25   : > { %s2841_s2 = sld [smem:[#allocation9_spill]] (!%p2079_p4) }
  0x26   : > { %s2842_s24 = sld [smem:[#allocation10_spill]] (!%p2079_p4) }
  0x27   : > { %s2843_s25 = sld [smem:[#allocation11_spill]] (!%p2079_p4) }
  0x28   : > { %s2844_s1 = sld [smem:[#allocation12_spill]] (!%p2079_p4) }
  0x29   : > { %v983_v1 = vld [vmem:[%s2839_s27] sm:$0xff]  ;;  %v2332_v3 = vmov 0   ;;  %vm1056_vm0 = vcmask 1041408   ;;  %v984_v8 = vld [vmem:[%s2839_s27 + $0x8] sm:$0xff]  ;;  %v985_v14 = vlaneseq  ;;  %v2333_v18 = vmov 0.0  }
  0x2a   : > { %v1012_v2 = vld [vmem:[%s2840_s7 + $0x30] sm:$0x3]  ;;  %2264 = vset.pattern.permute.xlu0 %v2332_v3  ;;  %v2223_v7 = vld [vmem:[%s2840_s7 + $0x28] sm:$0xff]  ;;  %v2222_v9 = vld [vmem:[%s2840_s7 + $0x20] sm:$0xff]  ;;  %vm1052_vm3 = vcmask 818176   ;;  %vm1085_vm4 = vcmask 261120  }
  0x2b   : > { %v1038_v4 = vunpack.c.l.b16 %v1012_v2  ;;  %988 = vperm.xlu0 %2264, %v983_v1   ;;  %v2221_v10 = vld [vmem:[%s2840_s7 + $0x18] sm:$0xff]  ;;  %v2220_v11 = vld [vmem:[%s2840_s7 + $0x10] sm:$0xff]  ;;  %v2219_v12 = vld [vmem:[%s2840_s7 + $0x8] sm:$0xff]  ;;  %v986_v16 = vand.u32 127, %v985_v14  ;;  %v2334_v32 = vmov 32.0  }
  0x2c   : > { %v2218_v13 = vld [vmem:[%s2840_s7] sm:$0xff]  ;;  %2268 = vrcp.f32 %v2334_v32 }
  0x2d   : > { %v1045_v5 = vpack.c.b16 %v1038_v4, %v1038_v4  ;;  %v1074_v22 = vld [vmem:[%s2841_s2] sm:$0xff] }
  0x2e   : > { %v2265_v23 = vld [vmem:[%s2842_s24] ss:$0 sm:$0xff] }
  0x2f   : > { %v1058_v6 = vsel %vm1056_vm0, %v1045_v5, 0  ;;  %v2266_v63 = vld [vmem:[%s2843_s25] ss:$0 sm:$0xff] }
  0x30   : > { %1061 = vmatpush.bf16.msra.mxu0 %v1058_v6  ;;  %v2267_v2 = vld [vmem:[%s2844_s1] ss:$0 sm:$0xff] }
  0x32   : > { %v2269_v33 = vpop.eup %2268 }
  0x33   : > { %991 = vperm.xlu0 %2264, %v984_v8   ;;  %v1093_v34 = vmul.f32 32.0, %v2269_v33  ;;  %vm1097_vm5 = vweird.f32 %v2269_v33 }
  0x34   : > { %1062 = vmatpush.bf16.msra.mxu0 %v2223_v7 }
  0x35   : > { %v1094_v35 = vsub.f32 1.0, %v1093_v34 }
  0x37   : > { %v1095_v36 = vmul.f32 %v2269_v33, %v1094_v35 }
  0x38   : > { %1063 = vmatpush.bf16.msra.mxu0 %v2222_v9 }
  0x39   : > { %v1096_v37 = vadd.f32 %v2269_v33, %v1095_v36 }
  0x3b   : > { %v1098_v38 = vsel %vm1097_vm5, %v2269_v33, %v1096_v37 }
  0x3c   : > { %1064 = vmatpush.bf16.msra.mxu0 %v2221_v10 }
  0x40   : > { %1065 = vmatpush.bf16.msra.mxu0 %v2220_v11 }
  0x44   : > { %1066 = vmatpush.bf16.msra.mxu0 %v2219_v12 }
  0x48   : > { %1067 = vmatpush.bf16.msra.mxu0 %v2218_v13 }
  0x9d   : > { %v989_v15 = vpop.permute.xlu0 %988 }
  0x9e   : > { %vm993_vm1 = vcmp.eq.s32.totalorder %v986_v16, %v989_v15 }
  0x9f   : > { %v2080_v19 = vsel %vm993_vm1, 1.0, %v2333_v18 }
  0xa5   : > { %v992_v17 = vpop.permute.xlu0 %991 }
  0xa6   : > { %vm994_vm2 = vcmp.eq.s32.totalorder %v986_v16, %v992_v17 }
  0xa7   : > { %v2081_v20 = vsel %vm994_vm2, 1.0, %v2333_v18 }
  0xa8   : > { %v999_v21 = vpack.c.bf16 %v2081_v20, %v2080_v19 }
  0xaa   : > { %2106 = vmatmul.msk.bf16.vlgmr.msra.gmra.mxu0 %vm1052_vm3, %v999_v21 }
 0x127   : > { %v1069_v24 = vpop.f32.mrf.mxu0 }
 0x128   : > { %v1076_v25 = vadd.f32 %v1074_v22, %v1069_v24 }
 0x12a   : > { %v1081_v26 = vadd.f32 %v2265_v23, %v1076_v25 }
 0x12c   : > { %v1086_v27 = vsel %vm1085_vm4, %v1081_v26, 0.0 }
 0x12d   : > { %1087 = vadd.xlane.f32.xlu1 %v1086_v27 }
 0x12f   : > { %v1071_v28 = vpop.f32.mrf.mxu0 }
 0x130   : > { %v1077_v29 = vadd.f32 %v1074_v22, %v1071_v28 }
 0x132   : > { %v1082_v30 = vadd.f32 %v2265_v23, %v1077_v29 }
 0x134   : > { %v1089_v31 = vsel %vm1085_vm4, %v1082_v30, 0.0 }
 0x135   : > { %1090 = vadd.xlane.f32.xlu1 %v1089_v31 }
 0x1a0   : > { %v1088_v39 = vpop.xlane.xlu1 %1087 }
 0x1a1   : > { %v1099_v40 = vmul.f32 %v1098_v38, %v1088_v39 }
 0x1a3   : > { %v1101_v41 = vsub.f32 %v1081_v26, %v1099_v40 }
 0x1a5   : > { %v1103_v42 = vmul.f32 %v1101_v41, %v1101_v41 }
 0x1a7   : > { %v1105_v43 = vsel %vm1085_vm4, %v1103_v42, 0.0 }
 0x1a8   : > { %1106 = vadd.xlane.f32.xlu2 %v1105_v43  ;;  %v1091_v44 = vpop.xlane.xlu1 %1090 }
 0x1a9   : > { %v1100_v45 = vmul.f32 %v1098_v38, %v1091_v44 }
 0x1ab   : > { %v1102_v46 = vsub.f32 %v1082_v30, %v1100_v45 }
 0x1ad   : > { %v1104_v47 = vmul.f32 %v1102_v46, %v1102_v46 }
 0x1af   : > { %v1108_v48 = vsel %vm1085_vm4, %v1104_v47, 0.0 }
 0x1b0   : > { %1109 = vadd.xlane.f32.xlu2 %v1108_v48 }
 0x21b   : > { %v1107_v49 = vpop.xlane.xlu2 %1106 }
 0x21c   : > { %v1111_v50 = vmul.f32 %v1107_v49, %v1098_v38 }
 0x21e   : > { %v1113_v51 = vadd.f32 1e-12, %v1111_v50 }
 0x220   : > { %2270 = vrsqrt.f32 %v1113_v51  ;;  %vm1121_vm7 = vweird.f32 %v1113_v51 }
 0x223   : > { %v1110_v52 = vpop.xlane.xlu2 %1109 }
 0x224   : > { %v1112_v53 = vmul.f32 %v1110_v52, %v1098_v38 }
 0x226   : > { %v2271_v54 = vpop.eup %2270  ;;  %v1114_v55 = vadd.f32 1e-12, %v1112_v53 }
 0x227   : > { %v1116_v56 = vmul.f32 %v2271_v54, %v1113_v51  ;;  %vm1122_vm6 = vweird.f32 %v2271_v54 }
 0x228   : > { %2272 = vrsqrt.f32 %v1114_v55  ;;  %vm1123_vm8 = vmor %vm1121_vm7, %vm1122_vm6  ;;  %vm1131_vm10 = vweird.f32 %v1114_v55 }
 0x229   : > { %v1117_v57 = vmul.f32 %v2271_v54, %v1116_v56 }
 0x22b   : > { %v1118_v58 = vmul.f32 0.5, %v1117_v57 }
 0x22d   : > { %v1119_v59 = vsub.f32 1.5, %v1118_v58 }
 0x22e   : > { %v2273_v60 = vpop.eup %2272 }
 0x22f   : > { %v1120_v61 = vmul.f32 %v2271_v54, %v1119_v59  ;;  %v1126_v62 = vmul.f32 %v2273_v60, %v1114_v55  ;;  %vm1132_vm9 = vweird.f32 %v2273_v60 }
 0x230   : > { %vm1133_vm11 = vmor %vm1131_vm10, %vm1132_vm9 }
 0x231   : > { %v1124_v0 = vsel %vm1123_vm8, %v2271_v54, %v1120_v61  ;;  %v1127_v1 = vmul.f32 %v2273_v60, %v1126_v62 }
 0x232   : > { %v1135_v3 = vmul.f32 %v1124_v0, %v1101_v41 }
 0x233   : > { %v1128_v4 = vmul.f32 0.5, %v1127_v1 }
 0x234   : > { %v1140_v5 = vmul.f32 %v2266_v63, %v1135_v3 }
 0x235   : > { %v1129_v6 = vsub.f32 1.5, %v1128_v4 }
 0x236   : > { %v1145_v7 = vadd.f32 %v2267_v2, %v1140_v5 }
 0x237   : > { %v1130_v8 = vmul.f32 %v2273_v60, %v1129_v6 }
 0x238   : > { %1147 = vst.msk [vmem:[#allocation2] sm:$0xff] %vm1085_vm4, %v1145_v7 }
 0x239   : > { %v1134_v9 = vsel %vm1133_vm11, %v2273_v60, %v1130_v8 }
 0x23a   : > { %v1136_v10 = vmul.f32 %v1134_v9, %v1102_v46 }
 0x23c   : > { %v1141_v11 = vmul.f32 %v2266_v63, %v1136_v10 }
 0x23e   : > { %v1146_v12 = vadd.f32 %v2267_v2, %v1141_v11 }
 0x240   : > { %1148 = vst.msk [vmem:[#allocation2 + $0x8] sm:$0xff] %vm1085_vm4, %v1146_v12 }
 0x241 PF: > { %v2225_v13 = vld [vmem:[%s2507_s11 + $0x8] sm:$0xff]  ;;  %v2224_v14 = vld [vmem:[%s2507_s11] sm:$0xff]  ;;  %vm1177_vm12 = vcmask 261120   ;;  %s2845_s10 = sld [smem:[#allocation14_spill]]  ;;  %s2335_s11 = smov 112   ;;  %vm1207_vm13 = vcmask 130048  }
 0x242   : > { %v2601_v15 = vld [vmem:[#allocation2] sm:$0xff]  ;;  %1187 = vmatpush.bf16.msra.mxu0 %v2225_v13  ;;  %s2336_s0 = smov 96   ;;  %s2847_s28 = sld [smem:[#allocation6_spill]]  ;;  %vm1312_vm14 = vcmask 64512   ;;  %vm1366_vm15 = vcmask 1043456   ;;  %vm1652_vm7 = vcmask 523264  }
 0x243   : > { %s2337_s9 = smov 64   ;;  %s2338_s1 = smov 16  }
 0x244   : > { %p2159_p5 = scmp.ne.s32.totalorder %s2491_s30, 1 }
 0x245   : > { %s2853_s21 = sld [smem:[#allocation7_spill]] (!%p2159_p5) }
 0x246   : > { %1188 = vmatpush.bf16.msra.mxu0 %v2224_v14  ;;  %s2859_s30 = sld [smem:[#allocation22_spill]] (!%p2159_p5) }
 0x247   : > { %v2603_v16 = vld [vmem:[#allocation2 + $0x8] sm:$0xff]  ;;  %s2846_s24 = scalar_lea.vmem %s2845_s10, %s2497_s26 }
 0x248   : > { %v1151_v17 = vpack.c.bf16 %v2603_v16, %v2601_v15  ;;  %v2279_v18 = vld [vmem:[%s2846_s24] ss:$0 sm:$0xff] }
 0x249   : > { %v1152_v41 = vld [vmem:[%s2847_s28] sm:$0xf]  ;;  %s2851_s28 = scalar_lea.vmem %s2798_s15, %s2497_s26 }
 0x24a   : > { %2115 = vmatmul.msk.bf16.vlgmr.msra.gmra.mxu0 %vm1177_vm12, %v1151_v17  ;;  %v1154_v42 = vrot.slane %v1152_v41, 1  ;;  %v1300_v52 = vperm.slane %v1152_v41, 0  ;;  %v1155_v58 = vrot.slane %v1152_v41, 2  ;;  %v1156_v59 = vrot.slane %v1152_v41, 3 }
 0x24c   : > { %v1301_v44 = vperm.slane %v1154_v42, 0  ;;  %v1302_v62 = vperm.slane %v1155_v58, 0  ;;  %v1303_v1 = vperm.slane %v1156_v59, 0 }
 0x2c7   : > { %v1190_v19 = vpop.f32.mrf.mxu0 }
 0x2c8   : > { %v1191_v20 = vadd.f32 %v2279_v18, %v1190_v19 }
 0x2ca   : > { %v1195_v21 = vpack.c.bf16 %v1191_v20, %v1191_v20 }
 0x2cc   : > { %1199 = vrot.lane.b32.xlu0 %v1195_v21, %s2335_s11  ;;  %v1203_v27 = vunpack.c.l.b16 %v1195_v21 }
 0x2ce   : > { %v2616_v28 = vpack.c.b16 %v1203_v27, %v1203_v27 }
 0x2cf   : > { %v1192_v22 = vpop.f32.mrf.mxu0 }
 0x2d0   : > { %v1193_v23 = vadd.f32 %v2279_v18, %v1192_v22 }
 0x2d2   : > { %v1196_v24 = vpack.c.bf16 %v1193_v23, %v1193_v23 }
 0x2d4   : > { %1201 = vrot.lane.b32.xlu0 %v1196_v24, %s2335_s11  ;;  %v1227_v25 = vunpack.c.l.b16 %v1196_v24 }
 0x2d6   : > { %v2613_v26 = vpack.c.b16 %v1227_v25, %v1227_v25 }
 0x2d8   : > { %1229 = vrot.lane.b32.xlu2 %v2613_v26, %s2336_s0 }
 0x2e0   : > { %1205 = vrot.lane.b32.xlu2 %v2616_v28, %s2336_s0 }
 0x332   : > { %v1230_v29 = vpop.permute.xlu2 %1229 }
 0x333   : > { %v1235_v30 = vsel %vm1207_vm13, %v1230_v29, 0 }
 0x334   : > { %1244 = vmatpush.bf16.xpose.msra.mxu2 %v1235_v30 }
 0x33a   : > { %v1206_v31 = vpop.permute.xlu2 %1205 }
 0x33b   : > { %2117 = vmatmul.msk.bf16.vlgmr.msra.gmra.mxu2 %vm1207_vm13, %v1196_v24  ;;  %v1212_v32 = vsel %vm1207_vm13, %v1206_v31, 0 }
 0x33c   : > { %1221 = vmatpush.bf16.xpose.msra.mxu1 %v1212_v32 }
 0x33e   : > { %v1200_v33 = vpop.permute.xlu0 %1199 }
 0x33f   : > { %v1250_v34 = vunpack.c.l.b16 %v1200_v33 }
 0x341   : > { %v1251_v35 = vpack.c.b16 %v1250_v34, %v1250_v34 }
 0x343   : > { %1252 = vrot.lane.b32.xlu1 %v1251_v35, %s2336_s0  ;;  %2116 = vmatmul.msk.bf16.vlgmr.msra.gmra.mxu1 %vm1207_vm13, %v1195_v21 }
 0x346   : > { %v1202_v36 = vpop.permute.xlu0 %1201 }
 0x347   : > { %v1273_v37 = vunpack.c.l.b16 %v1202_v36 }
 0x349   : > { %v2623_v38 = vpack.c.b16 %v1273_v37, %v1273_v37 }
 0x34b   : > { %1275 = vrot.lane.b32.xlu1 %v2623_v38, %s2336_s0  ;;  %s2850_s0 = scalar_lea.vmem %s2796_s13, %s2497_s26 }
 0x3b5   : > { %v1253_v39 = vpop.permute.xlu1 %1252 }
 0x3b6   : > { %v1258_v40 = vsel %vm1207_vm13, %v1253_v39, 0 }
 0x3b7   : > { %1267 = vmatpush.bf16.xpose.msra.mxu3 %v1258_v40 }
 0x3bd   : > { %v1276_v43 = vpop.permute.xlu1 %1275 }
 0x3be   : > { %v1246_v45 = vpop.f32.mrf.mxu2  ;;  %2118 = vmatmul.msk.bf16.vlgmr.msra.gmra.mxu3 %vm1207_vm13, %v1200_v33  ;;  %v1281_v46 = vsel %vm1207_vm13, %v1276_v43, 0 }
 0x3bf   : > { %v1297_v47 = vmul.f32 0.25, %v1246_v45  ;;  %1290 = vmatpush.bf16.xpose.msrb.mxu0 %v1281_v46 }
 0x3c0   : > { %v1223_v48 = vpop.f32.mrf.mxu1 }
 0x3c1   : > { %v1309_v49 = vadd.f32 %v1301_v44, %v1297_v47  ;;  %v1296_v50 = vmul.f32 0.25, %v1223_v48 }
 0x3c3   : > { %v1316_v51 = vsel %vm1312_vm14, %v1309_v49, -inf  ;;  %v1308_v54 = vadd.f32 %v1300_v52, %v1296_v50 }
 0x3c4   : > { %1317 = vmax.xlane.f32.xlu2 %v1316_v51 }
 0x3c5   : > { %v1313_v56 = vsel %vm1312_vm14, %v1308_v54, -inf }
 0x3c6   : > { %v1248_v53 = vpop.f32.mrf.mxu2  ;;  %2119 = vmatmul.msk.bf16.vlgmr.msrb.gmra.mxu0 %vm1207_vm13, %v1202_v36 }
 0x3c7   : > { %v2227_v53 = vld [vmem:[%s2512_s4 + $0x8] sm:$0xff] }
 0x3c8   : > { %v1225_v55 = vpop.f32.mrf.mxu1 }
 0x3cc   : > { %1314 = vmax.xlane.f32.xlu2 %v1313_v56 }
 0x3e4   : > { %1404 = vrot.lane.b32.xlu2 %v1251_v35, %s2337_s9 }
 0x437   : > { %v1318_v57 = vpop.xlane.xlu2 %1317 }
 0x438   : > { %v1326_v60 = vsub.f32 %v1309_v49, %v1318_v57 }
 0x43a   : > { %v1331_v2 = vmul.f32 1.442695, %v1326_v60 }
 0x43c   : > { %2287 = vpow2.f32 %v1331_v2 }
 0x43f   : > { %v1315_v61 = vpop.xlane.xlu2 %1314 }
 0x440   : > { %v1325_v8 = vsub.f32 %v1308_v54, %v1315_v61 }
 0x441   : > { %v1269_v63 = vpop.f32.mrf.mxu3 }
 0x442   : > { %v1298_v0 = vmul.f32 0.25, %v1269_v63  ;;  %v1329_v13 = vmul.f32 1.442695, %v1325_v8  ;;  %v2288_v17 = vpop.eup %2287  ;;  %v2226_v63 = vld [vmem:[%s2512_s4] sm:$0xff]  ;;  %s2852_s4 = sld [smem:[#allocation18_spill]] (!%p2159_p5) }
 0x443   : > { %v1292_v3 = vpop.f32.mrf.mxu0  ;;  %v1340_v18 = vsel %vm1312_vm14, %v2288_v17, 0.0 }
 0x444   : > { %v1299_v4 = vmul.f32 0.25, %v1292_v3  ;;  %v1310_v5 = vadd.f32 %v1302_v62, %v1298_v0  ;;  %2289 = vpow2.f32 %v1329_v13 }
 0x446   : > { %v1319_v6 = vsel %vm1312_vm14, %v1310_v5, -inf  ;;  %v1311_v7 = vadd.f32 %v1303_v1, %v1299_v4 }
 0x447   : > { %1320 = vmax.xlane.f32.xlu0 %v1319_v6  ;;  %v1405_v9 = vpop.permute.xlu2 %1404  ;;  %v2280_v6 = vld [vmem:[%s949_s23] ss:$0 sm:$0xff] }
 0x448   : > { %v1322_v10 = vsel %vm1312_vm14, %v1311_v7, -inf  ;;  %v1410_v11 = vsel %vm1366_vm15, %v1405_v9, 0 }
 0x449   : > { %v1271_v12 = vpop.f32.mrf.mxu3  ;;  %1323 = vmax.xlane.f32.xlu1 %v1322_v10  ;;  %1419 = vmatpush.bf16.msrb.mxu3 %v1410_v11 }
 0x44a   : > { %v2290_v19 = vpop.eup %2289 }
 0x44b   : > { %v1294_v14 = vpop.f32.mrf.mxu0  ;;  %v1337_v20 = vsel %vm1312_vm14, %v2290_v19, 0.0 }
 0x451   : > { %1341 = vadd.xlane.f32.xlu1 %v1340_v18 }
 0x459   : > { %1338 = vadd.xlane.f32.xlu1 %v1337_v20 }
 0x4ba   : > { %v1321_v21 = vpop.xlane.xlu0 %1320 }
 0x4bb   : > { %v1327_v22 = vsub.f32 %v1310_v5, %v1321_v21 }
 0x4bc   : > { %v1324_v23 = vpop.xlane.xlu1 %1323 }
 0x4bd   : > { %v1333_v24 = vmul.f32 1.442695, %v1327_v22  ;;  %v1328_v25 = vsub.f32 %v1311_v7, %v1324_v23 }
 0x4bf   : > { %2291 = vpow2.f32 %v1333_v24  ;;  %v1335_v27 = vmul.f32 1.442695, %v1328_v25 }
 0x4c1   : > { %2293 = vpow2.f32 %v1335_v27 }
 0x4c4   : > { %v1342_v33 = vpop.xlane.xlu1 %1341 }
 0x4c5   : > { %v2292_v29 = vpop.eup %2291 }
 0x4c6   : > { %v1343_v30 = vsel %vm1312_vm14, %v2292_v29, 0.0 }
 0x4c7   : > { %v2294_v31 = vpop.eup %2293  ;;  %1344 = vadd.xlane.f32.xlu0 %v1343_v30 }
 0x4c8   : > { %v1346_v32 = vsel %vm1312_vm14, %v2294_v31, 0.0 }
 0x4c9   : > { %1347 = vadd.xlane.f32.xlu1 %v1346_v32 }
 0x4cc   : > { %v1339_v34 = vpop.xlane.xlu1 %1338 }
 0x4db   : > { %1425 = vrot.lane.b32.xlu0 %v2623_v38, %s2337_s9 }
 0x4e2   : > { %1383 = vrot.lane.b32.xlu1 %v2613_v26, %s2337_s9 }
 0x4e3   : > { %1361 = vrot.lane.b32.xlu0 %v2616_v28, %s2337_s9 }
 0x53a   : > { %v1345_v35 = vpop.xlane.xlu0 %1344 }
 0x53b   : > { %2295 = vrcp.f32 %v1345_v35 }
 0x53c   : > { %v1348_v36 = vpop.xlane.xlu1 %1347 }
 0x53d   : > { %2297 = vrcp.f32 %v1348_v36 }
 0x53e   : > { %2299 = vrcp.f32 %v1342_v33 }
 0x53f   : > { %2301 = vrcp.f32 %v1339_v34  ;;  %v2229_v34 = vld [vmem:[%s2529_s6 + $0x8] sm:$0xff] }
 0x541   : > { %v2296_v37 = vpop.eup %2295 }
 0x542   : > { %v1355_v39 = vmul.f32 %v2296_v37, %v2292_v29  ;;  %v2228_v37 = vld [vmem:[%s2529_s6] sm:$0xff]  ;;  %s2849_s6 = scalar_lea.vmem %s2795_s12, %s2497_s26 }
 0x543   : > { %v2298_v41 = vpop.eup %2297 }
 0x544   : > { %v1359_v40 = vpack.c.bf16 %v1355_v39, %v1355_v39  ;;  %v1356_v38 = vmul.f32 %v2298_v41, %v2294_v31  ;;  %v2300_v28 = vpop.eup %2299 }
 0x545   : > { %v2302_v44 = vpop.eup %2301  ;;  %v1354_v45 = vmul.f32 %v2300_v28, %v2288_v17  ;;  %v2339_v17 = vmov 32.0  }
 0x546   : > { %2122 = vmatmul.msk.bf16.vlgmr.msrb.gmra.mxu3 %vm1312_vm14, %v1359_v40  ;;  %v1360_v43 = vpack.c.bf16 %v1356_v38, %v1356_v38  ;;  %v1353_v46 = vmul.f32 %v2302_v44, %v2290_v19  ;;  %2303 = vrcp.f32 %v2339_v17 }
 0x547   : > { %v1358_v51 = vpack.c.bf16 %v1354_v45, %v1354_v45 }
 0x548   : > { %v1357_v52 = vpack.c.bf16 %v1353_v46, %v1353_v46 }
 0x54c   : > { %v2304_v18 = vpop.eup %2303 }
 0x54d   : > { %v1426_v42 = vpop.permute.xlu0 %1425  ;;  %v1505_v19 = vmul.f32 32.0, %v2304_v18  ;;  %vm1509_vm0 = vweird.f32 %v2304_v18 }
 0x54e   : > { %v1431_v26 = vsel %vm1366_vm15, %v1426_v42, 0 }
 0x54f   : > { %1440 = vmatpush.bf16.msra.mxu0 %v1431_v26  ;;  %v1506_v20 = vsub.f32 1.0, %v1505_v19 }
 0x551   : > { %v1507_v21 = vmul.f32 %v2304_v18, %v1506_v20 }
 0x552   : > { %2123 = vmatmul.msk.bf16.vlgmr.msra.gmra.mxu0 %vm1312_vm14, %v1360_v43 }
 0x553   : > { %v1508_v22 = vadd.f32 %v2304_v18, %v1507_v21 }
 0x554   : > { %v1384_v47 = vpop.permute.xlu1 %1383 }
 0x555   : > { %v1362_v48 = vpop.permute.xlu0 %1361  ;;  %v1389_v49 = vsel %vm1366_vm15, %v1384_v47, 0 }
 0x556   : > { %1398 = vmatpush.bf16.msrb.mxu2 %v1389_v49  ;;  %v1368_v50 = vsel %vm1366_vm15, %v1362_v48, 0 }
 0x557   : > { %1377 = vmatpush.bf16.msrb.mxu1 %v1368_v50 }
 0x559   : > { %2121 = vmatmul.msk.bf16.vlgmr.msrb.gmra.mxu2 %vm1312_vm14, %v1358_v51 }
 0x55a   : > { %2120 = vmatmul.msk.bf16.vlgmr.msrb.gmra.mxu1 %vm1312_vm14, %v1357_v52  ;;  %1589 = vmatpush.bf16.msra.mxu2 %v2229_v34  ;;  %v2281_v52 = vld [vmem:[%s2849_s6] ss:$0 sm:$0xff]  ;;  %s2856_s6 = sld [smem:[#allocation17_spill]] (!%p2159_p5) }
 0x55b   : > { %1486 = vmatpush.bf16.msra.mxu1 %v2227_v53 }
 0x55e   : > { %1590 = vmatpush.bf16.msra.mxu2 %v2228_v37 }
 0x55f   : > { %1487 = vmatpush.bf16.msra.mxu1 %v2226_v63  ;;  %v2233_v63 = vld [vmem:[%s2539_s8 + $0x18] sm:$0xff] }
 0x560   : > { %1660 = vmatpush.bf16.msra.mxu3 %v2233_v63  ;;  %v2286_v63 = vld [vmem:[%s977_s22] ss:$0 sm:$0xff]  ;;  %s2858_s22 = sld [smem:[#allocation20_spill]] (!%p2159_p5) }
 0x5c9   : > { %v1421_v54 = vpop.f32.mrf.mxu3 }
 0x5cf   : > { %v1442_v55 = vpop.f32.mrf.mxu0 }
 0x5d0   : > { %v2274_v56 = vpack.i.bf16 %v1442_v55, %v1421_v54 }
 0x5d1   : > { %v1423_v57 = vpop.f32.mrf.mxu3 }
 0x5d2   : > { %2275 = vrot.lane.b32.xlu2 %v2274_v56, %s2338_s1  ;;  %v2282_v56 = vld [vmem:[%s2850_s0] ss:$0 sm:$0xff]  ;;  %s2857_s1 = sld [smem:[#allocation19_spill]] (!%p2159_p5) }
 0x5d7   : > { %v1379_v58 = vpop.f32.mrf.mxu1  ;;  %v1444_v59 = vpop.f32.mrf.mxu0 }
 0x5dc   : > { %v1400_v60 = vpop.f32.mrf.mxu2 }
 0x5df   : > { %v1381_v61 = vpop.f32.mrf.mxu1 }
 0x5e4   : > { %v1402_v62 = vpop.f32.mrf.mxu2 }
 0x62c   : > { %v2276_v0 = vpop.permute.xlu2 %2275 }
 0x62d   : > { %v2278_v1 = vunpack.i.h.bf16 %v2276_v0  ;;  %v2277_v2 = vunpack.i.l.bf16 %v2276_v0  ;;  %v2232_v0 = vld [vmem:[%s2539_s8 + $0x10] sm:$0xff] }
 0x62e   : > { %1661 = vmatpush.bf16.msra.mxu3 %v2232_v0 }
 0x62f   : > { %v1455_v3 = vsel %vm1207_vm13, %v1400_v60, %v2278_v1  ;;  %v1454_v4 = vsel %vm1207_vm13, %v1379_v58, %v2277_v2  ;;  %v2231_v1 = vld [vmem:[%s2539_s8 + $0x8] sm:$0xff]  ;;  %v2283_v2 = vld [vmem:[%s2851_s28] ss:$0 sm:$0xff] }
 0x630   : > { %v1456_v5 = vpack.c.bf16 %v1455_v3, %v1454_v4  ;;  %v2230_v3 = vld [vmem:[%s2539_s8] sm:$0xff]  ;;  %s2854_s8 = sld [smem:[#allocation21_spill]] (!%p2159_p5) }
 0x632   : > { %2132 = vmatmul.msk.bf16.vlgmr.msra.gmra.mxu1 %vm1177_vm12, %v1456_v5  ;;  %1662 = vmatpush.bf16.msra.mxu3 %v2231_v1 }
 0x636   : > { %1663 = vmatpush.bf16.msra.mxu3 %v2230_v3  ;;  %s2855_s9 = smov (!%p2159_p5), %s2854_s8 }
 0x6af   : > { %v1489_v7 = vpop.f32.mrf.mxu1 }
 0x6b0   : > { %v1490_v8 = vadd.f32 %v2280_v6, %v1489_v7 }
 0x6b2   : > { %v1494_v9 = vadd.f32 %v1490_v8, %v2601_v15  ;;  %v2670_v15 = vsel %vm1509_vm0, %v2304_v18, %v1508_v22 }
 0x6b4   : > { %v1498_v10 = vsel %vm1177_vm12, %v1494_v9, 0.0 }
 0x6b5   : > { %1499 = vadd.xlane.f32.xlu0 %v1498_v10 }
 0x6b7   : > { %v1491_v11 = vpop.f32.mrf.mxu1 }
 0x6b8   : > { %v1492_v12 = vadd.f32 %v2280_v6, %v1491_v11 }
 0x6ba   : > { %v1495_v13 = vadd.f32 %v1492_v12, %v2603_v16 }
 0x6bc   : > { %v1501_v14 = vsel %vm1177_vm12, %v1495_v13, 0.0 }
 0x6bd   : > { %1502 = vadd.xlane.f32.xlu2 %v1501_v14 }
 0x728   : > { %v1500_v23 = vpop.xlane.xlu0 %1499 }
 0x729   : > { %v1511_v24 = vmul.f32 %v2670_v15, %v1500_v23 }
 0x72b   : > { %v1513_v25 = vsub.f32 %v1494_v9, %v1511_v24 }
 0x72d   : > { %v1515_v16 = vmul.f32 %v1513_v25, %v1513_v25 }
 0x72f   : > { %v1517_v27 = vsel %vm1177_vm12, %v1515_v16, 0.0 }
 0x730   : > { %v1503_v29 = vpop.xlane.xlu2 %1502  ;;  %1518 = vadd.xlane.f32.xlu1 %v1517_v27 }
 0x731   : > { %v1512_v30 = vmul.f32 %v2670_v15, %v1503_v29 }
 0x733   : > { %v1514_v31 = vsub.f32 %v1495_v13, %v1512_v30  ;;  %v2284_v30 = vld [vmem:[%s971_s5] ss:$0 sm:$0xff] }
 0x735   : > { %v1516_v32 = vmul.f32 %v1514_v31, %v1514_v31 }
 0x737   : > { %v1520_v33 = vsel %vm1177_vm12, %v1516_v32, 0.0 }
 0x738   : > { %1521 = vadd.xlane.f32.xlu0 %v1520_v33 }
 0x7a3   : > { %v1519_v35 = vpop.xlane.xlu1 %1518 }
 0x7a4   : > { %v1523_v36 = vmul.f32 %v1519_v35, %v2670_v15 }
 0x7a6   : > { %v1525_v39 = vadd.f32 1e-12, %v1523_v36 }
 0x7a8   : > { %2305 = vrsqrt.f32 %v1525_v39  ;;  %vm1533_vm2 = vweird.f32 %v1525_v39 }
 0x7ab   : > { %v1522_v40 = vpop.xlane.xlu0 %1521 }
 0x7ac   : > { %v1524_v41 = vmul.f32 %v1522_v40, %v2670_v15 }
 0x7ae   : > { %v2306_v38 = vpop.eup %2305  ;;  %v1526_v42 = vadd.f32 1e-12, %v1524_v41 }
 0x7af   : > { %v1528_v26 = vmul.f32 %v2306_v38, %v1525_v39  ;;  %vm1534_vm1 = vweird.f32 %v2306_v38 }
 0x7b0   : > { %2307 = vrsqrt.f32 %v1526_v42  ;;  %vm1535_vm3 = vmor %vm1533_vm2, %vm1534_vm1  ;;  %vm1543_vm5 = vweird.f32 %v1526_v42 }
 0x7b1   : > { %v1529_v28 = vmul.f32 %v2306_v38, %v1528_v26 }
 0x7b3   : > { %v1530_v43 = vmul.f32 0.5, %v1529_v28 }
 0x7b5   : > { %v1531_v44 = vsub.f32 1.5, %v1530_v43 }
 0x7b6   : > { %v2308_v45 = vpop.eup %2307 }
 0x7b7   : > { %v1532_v46 = vmul.f32 %v2306_v38, %v1531_v44  ;;  %v1538_v47 = vmul.f32 %v2308_v45, %v1526_v42  ;;  %vm1544_vm4 = vweird.f32 %v2308_v45 }
 0x7b8   : > { %vm1545_vm6 = vmor %vm1543_vm5, %vm1544_vm4 }
 0x7b9   : > { %v1539_v48 = vmul.f32 %v2308_v45, %v1538_v47  ;;  %v1536_v49 = vsel %vm1535_vm3, %v2306_v38, %v1532_v46 }
 0x7ba   : > { %v1547_v53 = vmul.f32 %v1536_v49, %v1513_v25 }
 0x7bb   : > { %v1540_v50 = vmul.f32 0.5, %v1539_v48 }
 0x7bc   : > { %v1552_v57 = vmul.f32 %v2281_v52, %v1547_v53 }
 0x7bd   : > { %v1541_v51 = vsub.f32 1.5, %v1540_v50 }
 0x7be   : > { %v1557_v60 = vadd.f32 %v2282_v56, %v1552_v57 }
 0x7bf   : > { %v1542_v54 = vmul.f32 %v2308_v45, %v1541_v51 }
 0x7c1   : > { %v1546_v55 = vsel %vm1545_vm6, %v2308_v45, %v1542_v54 }
 0x7c2   : > { %v1548_v58 = vmul.f32 %v1546_v55, %v1514_v31 }
 0x7c4   : > { %v1553_v59 = vmul.f32 %v2281_v52, %v1548_v58 }
 0x7c6   : > { %v1558_v61 = vadd.f32 %v2282_v56, %v1553_v59 }
 0x7c8   : > { %v1559_v62 = vpack.c.bf16 %v1558_v61, %v1557_v60 }
 0x7ca   : > { %2141 = vmatmul.msk.bf16.vlgmr.msra.gmra.mxu2 %vm1177_vm12, %v1559_v62 }
 0x84d   : > { %v1592_v4 = vpop.f32.mrf.mxu2 }
 0x84e   : > { %v1593_v5 = vadd.f32 %v2283_v2, %v1592_v4 }
 0x850   : > { %v1597_v6 = vmul.f32 %v1593_v5, %v1593_v5 }
 0x852   : > { %v1599_v7 = vmul.f32 %v1597_v6, %v1593_v5 }
 0x854   : > { %v1601_v8 = vmul.f32 0.044715, %v1599_v7 }
 0x855   : > { %v1594_v9 = vpop.f32.mrf.mxu2 }
 0x856   : > { %v1603_v10 = vadd.f32 %v1601_v8, %v1593_v5  ;;  %v1595_v11 = vadd.f32 %v2283_v2, %v1594_v9 }
 0x858   : > { %v1605_v12 = vmul.f32 0.7978846, %v1603_v10  ;;  %v1598_v13 = vmul.f32 %v1595_v11, %v1595_v11 }
 0x85a   : > { %v1600_v14 = vmul.f32 %v1598_v13, %v1595_v11  ;;  %2309 = vtanh.f32 %v1605_v12 }
 0x85c   : > { %v1602_v17 = vmul.f32 0.044715, %v1600_v14 }
 0x85e   : > { %v1604_v18 = vadd.f32 %v1602_v17, %v1595_v11 }
 0x860   : > { %v1606_v19 = vmul.f32 0.7978846, %v1604_v18  ;;  %v2310_v20 = vpop.eup %2309 }
 0x861   : > { %v1609_v21 = vadd.f32 1.0, %v2310_v20 }
 0x862   : > { %2311 = vtanh.f32 %v1606_v19 }
 0x863   : > { %v1611_v23 = vmul.f32 0.5, %v1609_v21 }
 0x865   : > { %v1613_v16 = vmul.f32 %v1611_v23, %v1593_v5 }
 0x868   : > { %v2312_v22 = vpop.eup %2311 }
 0x869   : > { %v1610_v24 = vadd.f32 1.0, %v2312_v22 }
 0x86b   : > { %v1612_v25 = vmul.f32 0.5, %v1610_v24 }
 0x86d   : > { %v1614_v27 = vmul.f32 %v1612_v25, %v1595_v11 }
 0x86f   : > { %v1615_v29 = vpack.c.bf16 %v1614_v27, %v1613_v16 }
 0x871   : > { %2158 = vmatmul.msk.bf16.vlgmr.msra.gmra.mxu3 %vm1652_vm7, %v1615_v29 }
 0x8f4   : > { %v1665_v31 = vpop.f32.mrf.mxu3 }
 0x8f5   : > { %v1666_v32 = vadd.f32 %v2284_v30, %v1665_v31 }
 0x8f7   : > { %v1670_v33 = vadd.f32 %v1666_v32, %v1557_v60 }
 0x8f9   : > { %v1674_v34 = vsel %vm1177_vm12, %v1670_v33, 0.0 }
 0x8fa   : > { %1675 = vadd.xlane.f32.xlu2 %v1674_v34 }
 0x8fc   : > { %v1667_v35 = vpop.f32.mrf.mxu3 }
 0x8fd   : > { %v1668_v36 = vadd.f32 %v2284_v30, %v1667_v35 }
 0x8ff   : > { %v1671_v37 = vadd.f32 %v1668_v36, %v1558_v61  ;;  %v2285_v61 = vld [vmem:[%s974_s29] ss:$0 sm:$0xff] }
 0x901   : > { %v1677_v39 = vsel %vm1177_vm12, %v1671_v37, 0.0 }
 0x902   : > { %1678 = vadd.xlane.f32.xlu0 %v1677_v39 }
 0x96d   : > { %v1676_v40 = vpop.xlane.xlu2 %1675 }
 0x96e   : > { %v1680_v41 = vmul.f32 %v1676_v40, %v2670_v15 }
 0x970   : > { %v1682_v38 = vsub.f32 %v1670_v33, %v1680_v41 }
 0x972   : > { %v1684_v42 = vmul.f32 %v1682_v38, %v1682_v38 }
 0x974   : > { %v1686_v26 = vsel %vm1177_vm12, %v1684_v42, 0.0 }
 0x975   : > { %v1679_v28 = vpop.xlane.xlu0 %1678  ;;  %1687 = vadd.xlane.f32.xlu2 %v1686_v26 }
 0x976   : > { %v1681_v43 = vmul.f32 %v1679_v28, %v2670_v15 }
 0x978   : > { %v1683_v44 = vsub.f32 %v1671_v37, %v1681_v43 }
 0x97a   : > { %v1685_v45 = vmul.f32 %v1683_v44, %v1683_v44 }
 0x97c   : > { %v1689_v46 = vsel %vm1177_vm12, %v1685_v45, 0.0 }
 0x97d   : > { %1690 = vadd.xlane.f32.xlu1 %v1689_v46 }
 0x9e8   : > { %v1688_v47 = vpop.xlane.xlu2 %1687 }
 0x9e9   : > { %v1692_v48 = vmul.f32 %v1688_v47, %v2670_v15 }
 0x9eb   : > { %v1694_v49 = vadd.f32 1e-12, %v1692_v48 }
 0x9ed   : > { %2313 = vrsqrt.f32 %v1694_v49  ;;  %vm1702_vm9 = vweird.f32 %v1694_v49 }
 0x9f0   : > { %v1691_v50 = vpop.xlane.xlu1 %1690 }
 0x9f1   : > { %v1693_v51 = vmul.f32 %v1691_v50, %v2670_v15 }
 0x9f3   : > { %v2314_v52 = vpop.eup %2313  ;;  %v1695_v53 = vadd.f32 1e-12, %v1693_v51 }
 0x9f4   : > { %v1697_v54 = vmul.f32 %v2314_v52, %v1694_v49  ;;  %vm1703_vm8 = vweird.f32 %v2314_v52 }
 0x9f5   : > { %2315 = vrsqrt.f32 %v1695_v53  ;;  %vm1704_vm10 = vmor %vm1702_vm9, %vm1703_vm8  ;;  %vm1712_vm14 = vweird.f32 %v1695_v53 }
 0x9f6   : > { %v1698_v55 = vmul.f32 %v2314_v52, %v1697_v54 }
 0x9f8   : > { %v1699_v56 = vmul.f32 0.5, %v1698_v55 }
 0x9fa   : > { %v1700_v57 = vsub.f32 1.5, %v1699_v56 }
 0x9fb   : > { %v2316_v58 = vpop.eup %2315 }
 0x9fc   : > { %v1701_v59 = vmul.f32 %v2314_v52, %v1700_v57  ;;  %v1707_v60 = vmul.f32 %v2316_v58, %v1695_v53  ;;  %vm1713_vm11 = vweird.f32 %v2316_v58 }
 0x9fd   : > { %vm1714_vm15 = vmor %vm1712_vm14, %vm1713_vm11 }
 0x9fe   : > { %v1705_v15 = vsel %vm1704_vm10, %v2314_v52, %v1701_v59  ;;  %v1708_v62 = vmul.f32 %v2316_v58, %v1707_v60 }
 0x9ff   : > { %v1716_v0 = vmul.f32 %v1705_v15, %v1682_v38 }
 0xa00   : > { %v1709_v1 = vmul.f32 0.5, %v1708_v62 }
 0xa01   : > { %v1721_v2 = vmul.f32 %v2285_v61, %v1716_v0 }
 0xa02   : > { %v1710_v3 = vsub.f32 1.5, %v1709_v1 }
 0xa03   : > { %v1726_v4 = vadd.f32 %v2286_v63, %v1721_v2 }
 0xa04   : > { %v1711_v5 = vmul.f32 %v2316_v58, %v1710_v3 }
 0xa05   : > { %1728 = vst.msk [vmem:[#allocation2] sm:$0xff] %vm1177_vm12, %v1726_v4 }
 0xa06   : > { %v1715_v6 = vsel %vm1714_vm15, %v2316_v58, %v1711_v5 }
 0xa07   : > { %v1717_v7 = vmul.f32 %v1715_v6, %v1683_v44 }
 0xa09   : > { %v1722_v8 = vmul.f32 %v2285_v61, %v1717_v7  ;;  %1733 = sbr.rel (%p2159_p5) target bundleno = 3127 (0xc37), region = 136 }
 0xa0b   : > { %v1727_v9 = vadd.f32 %v2286_v63, %v1722_v8 }
 0xa0d   : > { %1729 = vst.msk [vmem:[#allocation2 + $0x8] sm:$0xff] %vm1177_vm12, %v1727_v9 }
 0xa0e   : > { %v1743_v10 = vpack.c.bf16 %v1727_v9, %v1726_v4  ;;  %v1734_v11 = vlaneseq  ;;  %v2235_v12 = vld [vmem:[%s2803_s20 + $0x8] sm:$0xff]  ;;  %v2340_v18 = vmov 0.0   ;;  %v2234_v21 = vld [vmem:[%s2803_s20] sm:$0xff]  ;;  %v2245_v29 = vld [vmem:[%s2854_s8 + $0x38] sm:$0xff]  ;;  %v2341_v30 = vmov 0  }
 0xa0f   : > { %1790 = vmatpush.bf16.msra.mxu1 %v2235_v12  ;;  %v2237_v25 = vld [vmem:[%s2852_s4 + $0x8] sm:$0xff]  ;;  %v2236_v16 = vld [vmem:[%s2852_s4] sm:$0xff]  ;;  %2317 = vset.pattern.permute.xlu0 %v2341_v30  ;;  %v2244_v31 = vld [vmem:[%s2855_s9 + $0x30] sm:$0xff] }
 0xa10   : > { %1754 = vmatpush.bf16.msra.mxu0 %v1743_v10  ;;  %v1735_v13 = vand.u32 127, %v1734_v11  ;;  %v1737_v14 = vshrl.u32 %v1734_v11, 7  ;;  %1835 = vmatpush.bf16.msra.mxu2 %v2237_v25  ;;  %v1803_v27 = vld [vmem:[%s2853_s21] sm:$0x3]  ;;  %v2243_v32 = vld [vmem:[%s2855_s9 + $0x28] sm:$0xff]  ;;  %v2241_v34 = vld [vmem:[%s2855_s9 + $0x18] sm:$0xff] }
 0xa11   : > { %1807 = vperm.xlu0 %2317, %v1803_v27   ;;  %1916 = vmatpush.bf16.msra.mxu3 %v2245_v29  ;;  %v2242_v33 = vld [vmem:[%s2855_s9 + $0x20] sm:$0xff]  ;;  %v2240_v36 = vld [vmem:[%s2855_s9 + $0x10] sm:$0xff]  ;;  %v2239_v42 = vld [vmem:[%s2855_s9 + $0x8] sm:$0xff] }
 0xa12   : > { %v1738_v17 = vmul.u32 8, %v1737_v14  ;;  %v2318_v35 = vld [vmem:[%s2856_s6] ss:$0 sm:$0xff]  ;;  %v2321_v51 = vld [vmem:[#allocation3] ss:$0 sm:$0xff] }
 0xa13   : > { %1791 = vmatpush.bf16.msra.mxu1 %v2234_v21  ;;  %v2238_v26 = vld [vmem:[%s2855_s9] sm:$0xff] }
 0xa14   : > { %vm1739_vm0 = vcmp.eq.s32.totalorder %v1735_v13, %v1738_v17  ;;  %1836 = vmatpush.bf16.msra.mxu2 %v2236_v16  ;;  %v2319_v28 = vld [vmem:[%s2857_s1] ss:$0 sm:$0xff] }
 0xa15   : > { %v2160_v19 = vsel %vm1739_vm0, 1.0, %v2340_v18  ;;  %1917 = vmatpush.bf16.msra.mxu3 %v2244_v31  ;;  %v2320_v45 = vld [vmem:[%s2858_s22] ss:$0 sm:$0xff] }
 0xa16   : > { %v1742_v20 = vpack.c.bf16 %v2160_v19, %v2160_v19 }
 0xa18   : > { %2161 = vmatmul.msk.bf16.vlgmr.msra.gmra.mxu0 %vm1207_vm13, %v1742_v20 }
 0xa19   : > { %1918 = vmatpush.bf16.msra.mxu3 %v2243_v32 }
 0xa1d   : > { %1919 = vmatpush.bf16.msra.mxu3 %v2242_v33 }
 0xa21   : > { %1920 = vmatpush.bf16.msra.mxu3 %v2241_v34 }
 0xa25   : > { %1921 = vmatpush.bf16.msra.mxu3 %v2240_v36 }
 0xa29   : > { %1922 = vmatpush.bf16.msra.mxu3 %v2239_v42 }
 0xa2d   : > { %1923 = vmatpush.bf16.msra.mxu3 %v2238_v26 }
 0xa83   : > { %v1808_v43 = vpop.permute.xlu0 %1807 }
 0xa84   : > { %v1813_v44 = vmul.f32 %v2319_v28, %v1808_v43 }
 0xa95   : > { %v1756_v22 = vpop.f32.mrf.mxu0 }
 0xa96   : > { %v1760_v23 = vpack.c.bf16 %v1756_v22, %v1756_v22 }
 0xa98   : > { %2170 = vmatmul.msk.bf16.vlgmr.msra.gmra.mxu1 %vm1177_vm12, %v1760_v23 }
 0xa9d   : > { %v1758_v24 = vpop.f32.mrf.mxu0 }
 0xb15   : > { %v1793_v37 = vpop.f32.mrf.mxu1 }
 0xb16   : > { %v1794_v39 = vadd.f32 %v2318_v35, %v1793_v37 }
 0xb18   : > { %2322 = vtanh.f32 %v1794_v39 }
 0xb1d   : > { %v1795_v40 = vpop.f32.mrf.mxu1 }
 0xb1e   : > { %v2323_v41 = vpop.eup %2322 }
 0xb1f   : > { %v1798_v38 = vpack.c.bf16 %v2323_v41, %v2323_v41 }
 0xb21   : > { %2179 = vmatmul.msk.bf16.vlgmr.msra.gmra.mxu2 %vm1177_vm12, %v1798_v38  ;;  %vm1929_vm12 = vcmask 1024  }
 0xba4   : > { %v1838_v46 = vpop.f32.mrf.mxu2 }
 0xba5   : > { %v1839_v47 = vadd.f32 %v1838_v46, %v1813_v44 }
 0xba7   : > { %v1846_v48 = vadd.f32 %v2320_v45, %v1839_v47 }
 0xba9   : > { %v1847_v49 = vpack.c.bf16 %v1846_v48, %v1846_v48 }
 0xbab   : > { %1924 = vmatmul.bf16.vlgmr.msra.gmra.mxu3 %v1847_v49 }
 0xbac   : > { %v1840_v50 = vpop.f32.mrf.mxu2 }
 0xc2e   : > { %v1925_v52 = vpop.f32.mrf.mxu3 }
 0xc2f   : > { %v1926_v53 = vadd.f32 %v2321_v51, %v1925_v52 }
 0xc31   : > { %1930 = vst.msk [vmem:[%s2859_s30] sm:$0x3] %vm1929_vm12, %v1926_v53 }
 0xc36   : > { %v1927_v54 = vpop.f32.mrf.mxu3 }
 0xc37 PF: > { %s2860_s10 = sld [smem:[#allocation4_spill]] }
 0xc3d   : > { %s39_s8 = sadd.s32 1, %s2860_s10  }
 0xc3e   : > { %p36_p6 = scmp.ge.s32.totalorder %s39_s8, 4  }
 0xc40   :  { %38 = sbr.rel (!%p36_p6) target bundleno = 19 (0x13), region = 195 }

</bundles_post_ra>
